<compile_context>
chip_gen: v5e
topology: v5e:2x2
jax: 0.10.0
libtpu: 0.0.40
codegen_flags: <defaults>
</compile_context>

<pallas_src>
import functools

import jax
import jax.numpy as jnp
from jax.experimental import pallas as pl
from jax.experimental.pallas import tpu as pltpu

TIME_WINDOW = 4
THRESH = 0.5
DECAY = 0.25
BN_EPS = 1e-5

# f32 keeps bit-faithful conv numerics vs the PyTorch reference.  Set to
# jnp.bfloat16 on v6e/v7x to halve MXU-operand bytes (spikes are exactly 0/1 in
# bf16; only the conv weights get rounded).  BN statistics are always taken from
# the f32 matmul accumulator, so stats never see a low-precision roundtrip.
CONV_COMPUTE_DTYPE = jnp.float32

VMEM_LIMIT = 32 * 1024 * 1024          # scoped-VMEM limit: safe on v7x (64 MiB/TC)
BLOCK_BYTES_BUDGET = 4 * 1024 * 1024   # per-block working-set target (raise on v6e)


def _compiler_params():
    return pltpu.CompilerParams(
        dimension_semantics=("parallel",),
        vmem_limit_bytes=VMEM_LIMIT,
    )


def _images_per_block(num_images, bytes_per_image):
    """Largest divisor of num_images whose block stays under the VMEM budget.
    No forced minimum block count: big blocks win on single-TC v5e/v6e; for
    large inputs the budget naturally yields several grid steps (pipelining /
    v7x megacore)."""
    cap = int(max(1, min(num_images, BLOCK_BYTES_BUDGET // max(1, bytes_per_image))))
    return max(d for d in range(1, cap + 1) if num_images % d == 0)


def _tile_rows(rows, bytes_per_row):
    """Largest 8-aligned divisor of `rows` under the budget (full extent fallback
    always satisfies the (8,128) BlockSpec rule)."""
    cap = int(max(1, min(rows, BLOCK_BYTES_BUDGET // max(1, bytes_per_row))))
    divs = [d for d in range(1, cap + 1) if rows % d == 0 and d % 8 == 0]
    return divs[-1] if divs else rows


# --------------------------- banded conv weights ------------------------------
def _banded_weight(w_kkio, Wd):
    """(3,3,Cin,Cout) conv taps -> (3, Wd*Cin, Wd*Cout) block-banded matrices M_ky:
    M[ky, (x+kx-1)*Cin + ci, x*Cout + co] = w[ky, kx, ci, co]; out-of-range kx
    entries stay zero, which realizes the horizontal zero padding."""
    _, _, Cin, Cout = w_kkio.shape
    xin = jnp.arange(Wd).reshape(1, Wd, 1)
    xout = jnp.arange(Wd).reshape(1, 1, Wd)
    kx = jnp.arange(3).reshape(3, 1, 1)
    band = (xin == xout + kx - 1).astype(w_kkio.dtype)             # (3, Wd, Wd)
    m = jnp.einsum("kax,ykio->yaixo", band, w_kkio)                # (3, Wd, Cin, Wd, Cout)
    return m.reshape(3, Wd * Cin, Wd * Cout).astype(CONV_COMPUTE_DTYPE)


# ------------- fused [BN-affine] -> LIF spike -> conv3x3 -> BN stats ----------
def _bn_spike_conv_kernel(x_ref, m_ref, s_ref, t_ref, o_ref, sum_ref, sq_ref,
                          spk_ref, *, H):
    # x_ref : (T, MT, L)   lane-dense input block (L = W*Cin)
    # m_ref : (3, L, Lo)   banded conv weights (ky = 0, 1, 2)
    # s/t   : (1, L)       folded BN scale/shift applied to the membrane drive
    # o_ref : (T, MT, Lo)  conv output block (f32)
    # sum/sq: (1, 1, Lo)   per-lane partial BN statistics of this block
    # spk_ref: (MT+2, L)   spike scratch with one zero halo row above and below
    T, MT, L = x_ref.shape
    Lo = o_ref.shape[-1]
    scale = s_ref[...]
    shift = t_ref[...]

    # Zero only the two halo rows (interior rows are overwritten every timestep;
    # no full-scratch clear per grid step).
    zrow = jnp.zeros((1, L), spk_ref.dtype)
    spk_ref[0:1, :] = zrow
    spk_ref[MT + 1:MT + 2, :] = zrow

    # Vertical zero-padding masks: rows are h-minor within each image, so the
    # ky=0 (row above) / ky=2 (row below) terms are invalid at h==0 / h==H-1.
    h_idx = jax.lax.broadcasted_iota(jnp.int32, (MT, Lo), 0) % H
    top = (h_idx > 0).astype(jnp.float32)
    bot = (h_idx < H - 1).astype(jnp.float32)

    lane_sum = jnp.zeros((1, Lo), jnp.float32)
    lane_sq = jnp.zeros((1, Lo), jnp.float32)
    mem = None
    spk = None
    for i in range(T):                    # time_window is tiny & static -> unrolled
        drive = x_ref[i] * scale + shift  # folded BN (identity on the first block)
        mem = drive if i == 0 else mem * DECAY * (1.0 - spk) + drive
        spk = (mem > THRESH).astype(jnp.float32)     # ActFun: (mem > thresh).float()
        s_cd = spk.astype(CONV_COMPUTE_DTYPE)
        spk_ref[1:MT + 1, :] = s_cd
        # 3x3/s1/p1 conv = 3 dense (MT, L) @ (L, Lo) MXU matmuls over row-shifted
        # views of the spike scratch (halo rows provide the vertical padding).
        y = jnp.dot(s_cd, m_ref[1], preferred_element_type=jnp.float32)
        y = y + top * jnp.dot(spk_ref[0:MT, :], m_ref[0],
                              preferred_element_type=jnp.float32)
        y = y + bot * jnp.dot(spk_ref[2:MT + 2, :], m_ref[2],
                              preferred_element_type=jnp.float32)
        o_ref[i] = y.astype(o_ref.dtype)
        # per-lane partial BN statistics from the f32 accumulator
        lane_sum = lane_sum + jnp.sum(y, axis=0, keepdims=True)
        lane_sq = lane_sq + jnp.sum(y * y, axis=0, keepdims=True)

    sum_ref[...] = lane_sum.reshape(1, 1, Lo)
    sq_ref[...] = lane_sq.reshape(1, 1, Lo)


def fused_bn_spike_conv3x3(x_tml, m_band, scale_1l, shift_1l, *, H):
    """(scale,shift) prologue -> LIF spike over T -> 3x3/s1/p1 conv -> BN partials.

    x_tml: (T, N*H, W*Cin) lane-dense, rows h-minor within each image.
    Returns (conv_out (T, N*H, W*Cout), lane_sum (G,1,Lo), lane_sq (G,1,Lo))."""
    T, M, L = x_tml.shape
    Lo = m_band.shape[-1]
    assert m_band.shape[1] == L
    assert M % H == 0, "rows must contain whole images"
    n_img = M // H
    per_img = (T * H * (L + Lo) + 2 * Lo) * 4          # in + out rows per image (f32)
    mt = _images_per_block(n_img, per_img) * H
    if mt % 8 != 0:        # (8,128) rule: second-minor block dim 8-aligned or full
        mt = M             # TODO(synk): masked cdiv tiling for H not a multiple of 8
    grid = (M // mt,)
    kern = functools.partial(_bn_spike_conv_kernel, H=H)
    return pl.pallas_call(
        kern,
        out_shape=(
            jax.ShapeDtypeStruct((T, M, Lo), x_tml.dtype),
            jax.ShapeDtypeStruct((grid[0], 1, Lo), jnp.float32),
            jax.ShapeDtypeStruct((grid[0], 1, Lo), jnp.float32),
        ),
        grid=grid,
        in_specs=[
            pl.BlockSpec((T, mt, L), lambda i: (0, i, 0)),
            pl.BlockSpec((3, L, Lo), lambda i: (0, 0, 0)),
            pl.BlockSpec((1, L), lambda i: (0, 0)),
            pl.BlockSpec((1, L), lambda i: (0, 0)),
        ],
        out_specs=(
            pl.BlockSpec((T, mt, Lo), lambda i: (0, i, 0)),
            pl.BlockSpec((1, 1, Lo), lambda i: (i, 0, 0)),
            pl.BlockSpec((1, 1, Lo), lambda i: (i, 0, 0)),
        ),
        scratch_shapes=[pltpu.VMEM((mt + 2, L), CONV_COMPUTE_DTYPE)],
        compiler_params=_compiler_params(),
    )(x_tml, m_band, scale_1l, shift_1l)


# ----------------------------- BN folding (tiny) ------------------------------
def _fold_bn_from_stats(lane_sum, lane_sq, gamma, beta, num_w, num_c, count):
    """Per-channel training-mode BN folded to per-lane (scale, shift).
    lane_*: (G, 1, W*C) per-block per-lane partial sums; lane j -> channel j % C."""
    s = jnp.sum(lane_sum.reshape(-1, num_w, num_c), axis=(0, 1))     # (C,)
    q = jnp.sum(lane_sq.reshape(-1, num_w, num_c), axis=(0, 1))
    mean = s / count
    var = q / count - mean * mean                   # biased variance (training mode)
    scale = gamma * jax.lax.rsqrt(var + BN_EPS)
    shift = beta - mean * scale
    return (jnp.tile(scale, num_w).reshape(1, num_w * num_c),
            jnp.tile(shift, num_w).reshape(1, num_w * num_c))


# ------------------- fused BN2-apply + residual add ---------------------------
def _bn_add_kernel(c_ref, r_ref, s_ref, t_ref, o_ref):
    o_ref[...] = (c_ref[...] * s_ref[...] + t_ref[...] + r_ref[...]).astype(o_ref.dtype)


def bn_add(c_ml, r_ml, scale_1l, shift_1l):
    M, L = c_ml.shape
    mt = _tile_rows(M, 3 * L * 4)
    return pl.pallas_call(
        _bn_add_kernel,
        out_shape=jax.ShapeDtypeStruct((M, L), c_ml.dtype),
        grid=(M // mt,),
        in_specs=[
            pl.BlockSpec((mt, L), lambda i: (i, 0)),
            pl.BlockSpec((mt, L), lambda i: (i, 0)),
            pl.BlockSpec((1, L), lambda i: (0, 0)),
            pl.BlockSpec((1, L), lambda i: (0, 0)),
        ],
        out_specs=pl.BlockSpec((mt, L), lambda i: (i, 0)),
        compiler_params=_compiler_params(),
    )(c_ml, r_ml, scale_1l, shift_1l)


# ----------------------------- BasicBlock forward -----------------------------
def basic_block(x_tnchw, w1, w2, gamma1, beta1, gamma2, beta2):
    """out = BN2(conv3x3(spike(BN1(conv3x3(spike(x), W1))), W2)) + x
    (stride=1, Cin == Cout -> identity shortcut; PruningCell treated as identity)."""
    T, N, C, H, W = x_tnchw.shape
    Cout = w1.shape[-1]
    assert w1.shape[:2] == (3, 3) and w2.shape[:2] == (3, 3)
    assert C == Cout and w2.shape[-1] == Cout, "identity-shortcut config only"
    L = W * C
    count = T * N * H * W      # BN normalizes per channel over (N, T, H, W)

    # NCHW -> lane-dense (T, N*H, W*C).  TODO(synk): the two boundary transposes
    # are still XLA ops; folding them into the first/last kernel would save one
    # extra HBM pass each way at large shapes.
    x = jnp.transpose(x_tnchw, (0, 1, 3, 4, 2)).reshape(T, N * H, L)

    m1 = _banded_weight(w1, W)
    m2 = _banded_weight(w2, W)
    one = jnp.ones((1, L), jnp.float32)
    zero = jnp.zeros((1, L), jnp.float32)

    # spike(x) -> conv1   (+ BN1 partial stats, no HBM re-read of c1 for BN)
    c1, s1, q1 = fused_bn_spike_conv3x3(x, m1, one, zero, H=H)
    sc1, sh1 = _fold_bn_from_stats(s1, q1, gamma1, beta1, W, Cout, count)
    # BN1-apply -> spike -> conv2   (+ BN2 partial stats)
    c2, s2, q2 = fused_bn_spike_conv3x3(c1, m2, sc1, sh1, H=H)
    sc2, sh2 = _fold_bn_from_stats(s2, q2, gamma2, beta2, W, Cout, count)
    # BN2-apply + identity shortcut (kept separate: BN2 needs global c2 stats)
    out = bn_add(c2.reshape(T * N * H, L), x.reshape(T * N * H, L), sc2, sh2)

    out = out.reshape(T, N, H, W, Cout)
    return jnp.transpose(out, (0, 1, 4, 2, 3))        # (T, N, Cout, H, W)


# ----------------------------- pure-JAX reference -----------------------------
def _reference_basic_block(x, w1, w2, g1, b1, g2, b2):
    def spike(v):
        outs = [(v[0] > THRESH).astype(v.dtype)]
        mem = v[0]
        for i in range(1, v.shape[0]):
            mem = mem * DECAY * (1.0 - outs[-1]) + v[i]
            outs.append((mem > THRESH).astype(v.dtype))
        return jnp.stack(outs)

    def conv(v, w):
        T_, N_, C_, H_, W_ = v.shape
        y = jax.lax.conv_general_dilated(
            v.reshape(T_ * N_, C_, H_, W_), w, (1, 1), "SAME",
            dimension_numbers=("NCHW", "HWIO", "NCHW"))
        return y.reshape(T_, N_, -1, H_, W_)

    def bn(v, gamma, beta):
        mean = jnp.mean(v, axis=(0, 1, 3, 4), keepdims=True)
        var = jnp.mean(jnp.square(v - mean), axis=(0, 1, 3, 4), keepdims=True)
        g = gamma.reshape(1, 1, -1, 1, 1)
        b = beta.reshape(1, 1, -1, 1, 1)
        return (v - mean) * jax.lax.rsqrt(var + BN_EPS) * g + b

    y = bn(conv(spike(x), w1), g1, b1)
    y = bn(conv(spike(y), w2), g2, b2)
    return y + x


if __name__ == "__main__":
    T, N, C_in, H, W = TIME_WINDOW, 2, 8, 16, 16
    C_out = C_in  # stride=1, Cin == Cout -> shortcut is nn.Sequential() (identity)

    key = jax.random.PRNGKey(0)
    k1, k2, kx = jax.random.split(key, 3)
    # PyTorch Conv2d default init: U(-1/sqrt(fan_in), 1/sqrt(fan_in)), fan_in = Cin*9
    bound1 = 1.0 / float(C_in * 9) ** 0.5
    w1 = jax.random.uniform(k1, (3, 3, C_in, C_out), jnp.float32, -bound1, bound1)
    bound2 = 1.0 / float(C_out * 9) ** 0.5
    w2 = jax.random.uniform(k2, (3, 3, C_out, C_out), jnp.float32, -bound2, bound2)

    gamma1 = jnp.full((C_out,), THRESH, jnp.float32)        # BatchNorm3d1: weight = thresh
    gamma2 = jnp.full((C_out,), 0.2 * THRESH, jnp.float32)  # BatchNorm3d2: weight = 0.2*thresh
    beta = jnp.zeros((C_out,), jnp.float32)

    x = jax.random.normal(kx, (T, N, C_in, H, W), jnp.float32)

    out = jax.jit(basic_block)(x, w1, w2, gamma1, beta, gamma2, beta)
    jax.block_until_ready(out)
    assert out.shape == (T, N, C_out, H, W), out.shape
    assert bool(jnp.all(jnp.isfinite(out)))

    # Structural-correctness guard vs a pure-JAX reference (mean abs error; tolerant
    # of the rare borderline spike-threshold flip from summation-order differences).
    ref = _reference_basic_block(x, w1, w2, gamma1, beta, gamma2, beta)
    mean_err = float(jnp.mean(jnp.abs(out - ref)))
    assert mean_err < 1e-3, f"mean |err| vs reference too large: {mean_err}"

    print("KERNEL_OK")
</pallas_src>

<mosaic_0001>
module attributes {stable_mosaic.version = 11 : i64} {
  func.func @_bn_spike_conv_kernel(%arg0: i32, %arg1: memref<4x32x128xf32, #tpu.memory_space<vmem>>, %arg2: memref<3x128x128xf32, #tpu.memory_space<vmem>>, %arg3: memref<1x128xf32, #tpu.memory_space<vmem>>, %arg4: memref<1x128xf32, #tpu.memory_space<vmem>>, %arg5: memref<4x32x128xf32, #tpu.memory_space<vmem>>, %arg6: memref<1x1x128xf32, #tpu.memory_space<vmem>>, %arg7: memref<1x1x128xf32, #tpu.memory_space<vmem>>, %arg8: memref<34x128xf32, #tpu.memory_space<vmem>>) attributes {dimension_semantics = [#tpu.dimension_semantics<parallel>], iteration_bounds = array<i64: 1>, scalar_prefetch = 0 : i64, scratch_operands = 1 : i64, tpu.core_type = #tpu.core_type<tc>, window_params = [{transform_indices = @transform_0, window_bounds = array<i64: 4, 32, 128>}, {pipeline_mode = #tpu.pipeline_mode<synchronous>, transform_indices = @transform_1, window_bounds = array<i64: 3, 128, 128>}, {pipeline_mode = #tpu.pipeline_mode<synchronous>, transform_indices = @transform_2, window_bounds = array<i64: 1, 128>}, {pipeline_mode = #tpu.pipeline_mode<synchronous>, transform_indices = @transform_3, window_bounds = array<i64: 1, 128>}, {transform_indices = @transform_4, window_bounds = array<i64: 4, 32, 128>}, {transform_indices = @transform_5, window_bounds = array<i64: 1, 1, 128>}, {transform_indices = @transform_6, window_bounds = array<i64: 1, 1, 128>}]} {
    %c0 = arith.constant 0 : index
    %c0_0 = arith.constant 0 : index
    %0 = vector.load %arg3[%c0, %c0_0] : memref<1x128xf32, #tpu.memory_space<vmem>>, vector<1x128xf32>
    %c0_1 = arith.constant 0 : index
    %c0_2 = arith.constant 0 : index
    %1 = vector.load %arg4[%c0_1, %c0_2] : memref<1x128xf32, #tpu.memory_space<vmem>>, vector<1x128xf32>
    %cst = arith.constant 0.000000e+00 : f32
    %2 = vector.broadcast %cst : f32 to vector<1x128xf32>
    %c0_3 = arith.constant 0 : index
    %c0_4 = arith.constant 0 : index
    %3 = vector.load %arg8[%c0_3, %c0_4] : memref<34x128xf32, #tpu.memory_space<vmem>>, vector<1x128xf32>
    tpu.vector_store %arg8[%c0_3, %c0_4], %2 {strides = array<i32>} : memref<34x128xf32, #tpu.memory_space<vmem>>, vector<1x128xf32>,
    %c33 = arith.constant 33 : index
    %c0_5 = arith.constant 0 : index
    %4 = vector.load %arg8[%c33, %c0_5] : memref<34x128xf32, #tpu.memory_space<vmem>>, vector<1x128xf32>
    tpu.vector_store %arg8[%c33, %c0_5], %2 {strides = array<i32>} : memref<34x128xf32, #tpu.memory_space<vmem>>, vector<1x128xf32>,
    %5 = tpu.iota {dimensions = array<i32: 0>} : vector<32x128xi32>
    %c16_i32 = arith.constant 16 : i32
    %c0_i32 = arith.constant 0 : i32
    %6 = arith.cmpi eq, %c16_i32, %c0_i32 : i32
    %c1_i32 = arith.constant 1 : i32
    %7 = arith.select %6, %c1_i32, %c16_i32 : i32
    %8 = vector.broadcast %7 : i32 to vector<32x128xi32>
    %9 = arith.remsi %5, %8 : vector<32x128xi32>
    %c0_i32_6 = arith.constant 0 : i32
    %10 = vector.broadcast %c0_i32_6 : i32 to vector<32x128xi32>
    %11 = arith.cmpi ne, %9, %10 : vector<32x128xi32>
    %c0_i32_7 = arith.constant 0 : i32
    %12 = vector.broadcast %c0_i32_7 : i32 to vector<32x128xi32>
    %13 = arith.cmpi slt, %9, %12 : vector<32x128xi32>
    %c0_i32_8 = arith.constant 0 : i32
    %14 = arith.cmpi slt, %7, %c0_i32_8 : i32
    %15 = vector.broadcast %14 : i1 to vector<32x128xi1>
    %16 = vector.broadcast %15 : vector<32x128xi1> to vector<32x128xi1>
    %17 = arith.xori %13, %16 : vector<32x128xi1>
    %18 = arith.andi %17, %11 : vector<32x128xi1>
    %19 = vector.broadcast %7 : i32 to vector<32x128xi32>
    %20 = arith.addi %9, %19 : vector<32x128xi32>
    %21 = arith.select %18, %20, %9 : vector<32x128xi1>, vector<32x128xi32>
    %c0_i32_9 = arith.constant 0 : i32
    %22 = vector.broadcast %c0_i32_9 : i32 to vector<32x128xi32>
    %23 = arith.cmpi sgt, %21, %22 : vector<32x128xi32>
    %24 = arith.extui %23 : vector<32x128xi1> to vector<32x128xi32>
    %25 = arith.sitofp %24 : vector<32x128xi32> to vector<32x128xf32>
    %c15_i32 = arith.constant 15 : i32
    %26 = vector.broadcast %c15_i32 : i32 to vector<32x128xi32>
    %27 = arith.cmpi slt, %21, %26 : vector<32x128xi32>
    %28 = arith.extui %27 : vector<32x128xi1> to vector<32x128xi32>
    %29 = arith.sitofp %28 : vector<32x128xi32> to vector<32x128xf32>
    %cst_10 = arith.constant 0.000000e+00 : f32
    %30 = vector.broadcast %cst_10 : f32 to vector<1x128xf32>
    %cst_11 = arith.constant 0.000000e+00 : f32
    %31 = vector.broadcast %cst_11 : f32 to vector<1x128xf32>
    %c0_12 = arith.constant 0 : index
    %c0_13 = arith.constant 0 : index
    %c0_14 = arith.constant 0 : index
    %32 = vector.load %arg1[%c0_12, %c0_13, %c0_14] : memref<4x32x128xf32, #tpu.memory_space<vmem>>, vector<1x32x128xf32>
    %33 = vector.shape_cast %32 : vector<1x32x128xf32> to vector<32x128xf32>
    %34 = vector.broadcast %0 : vector<1x128xf32> to vector<32x128xf32>
    %35 = arith.mulf %33, %34 : vector<32x128xf32>
    %36 = vector.broadcast %1 : vector<1x128xf32> to vector<32x128xf32>
    %37 = arith.addf %35, %36 : vector<32x128xf32>
    %cst_15 = arith.constant 5.000000e-01 : f32
    %38 = vector.broadcast %cst_15 : f32 to vector<32x128xf32>
    %39 = arith.cmpf ogt, %37, %38 : vector<32x128xf32>
    %40 = arith.extui %39 : vector<32x128xi1> to vector<32x128xi32>
    %41 = arith.sitofp %40 : vector<32x128xi32> to vector<32x128xf32>
    %c1 = arith.constant 1 : index
    %c0_16 = arith.constant 0 : index
    %42 = vector.load %arg8[%c1, %c0_16] : memref<34x128xf32, #tpu.memory_space<vmem>>, vector<32x128xf32>
    tpu.vector_store %arg8[%c1, %c0_16], %41 {strides = array<i32>} : memref<34x128xf32, #tpu.memory_space<vmem>>, vector<32x128xf32>,
    %c1_17 = arith.constant 1 : index
    %c0_18 = arith.constant 0 : index
    %c0_19 = arith.constant 0 : index
    %43 = vector.load %arg2[%c1_17, %c0_18, %c0_19] : memref<3x128x128xf32, #tpu.memory_space<vmem>>, vector<1x128x128xf32>
    %44 = vector.shape_cast %43 : vector<1x128x128xf32> to vector<128x128xf32>
    %cst_20 = arith.constant dense<0.000000e+00> : vector<32x128xf32>
    %45 = tpu.matmul %41, %44, %cst_20 {dimension_numbers = #tpu.dot_dimension_numbers<[1], [0], [0], [1], [0, 0, 1, 1], [], []>} : vector<32x128xf32>, vector<128x128xf32>, vector<32x128xf32> -> vector<32x128xf32>
    %c0_21 = arith.constant 0 : index
    %c0_22 = arith.constant 0 : index
    %46 = vector.load %arg8[%c0_21, %c0_22] : memref<34x128xf32, #tpu.memory_space<vmem>>, vector<32x128xf32>
    %c0_23 = arith.constant 0 : index
    %c0_24 = arith.constant 0 : index
    %c0_25 = arith.constant 0 : index
    %47 = vector.load %arg2[%c0_23, %c0_24, %c0_25] : memref<3x128x128xf32, #tpu.memory_space<vmem>>, vector<1x128x128xf32>
    %48 = vector.shape_cast %47 : vector<1x128x128xf32> to vector<128x128xf32>
    %cst_26 = arith.constant dense<0.000000e+00> : vector<32x128xf32>
    %49 = tpu.matmul %46, %48, %cst_26 {dimension_numbers = #tpu.dot_dimension_numbers<[1], [0], [0], [1], [0, 0, 1, 1], [], []>} : vector<32x128xf32>, vector<128x128xf32>, vector<32x128xf32> -> vector<32x128xf32>
    %50 = arith.mulf %25, %49 : vector<32x128xf32>
    %51 = arith.addf %45, %50 : vector<32x128xf32>
    %c2 = arith.constant 2 : index
    %c0_27 = arith.constant 0 : index
    %52 = vector.load %arg8[%c2, %c0_27] : memref<34x128xf32, #tpu.memory_space<vmem>>, vector<32x128xf32>
    %c2_28 = arith.constant 2 : index
    %c0_29 = arith.constant 0 : index
    %c0_30 = arith.constant 0 : index
    %53 = vector.load %arg2[%c2_28, %c0_29, %c0_30] : memref<3x128x128xf32, #tpu.memory_space<vmem>>, vector<1x128x128xf32>
    %54 = vector.shape_cast %53 : vector<1x128x128xf32> to vector<128x128xf32>
    %cst_31 = arith.constant dense<0.000000e+00> : vector<32x128xf32>
    %55 = tpu.matmul %52, %54, %cst_31 {dimension_numbers = #tpu.dot_dimension_numbers<[1], [0], [0], [1], [0, 0, 1, 1], [], []>} : vector<32x128xf32>, vector<128x128xf32>, vector<32x128xf32> -> vector<32x128xf32>
    %56 = arith.mulf %29, %55 : vector<32x128xf32>
    %57 = arith.addf %51, %56 : vector<32x128xf32>
    %c0_32 = arith.constant 0 : index
    %c0_33 = arith.constant 0 : index
    %c0_34 = arith.constant 0 : index
    %58 = vector.load %arg5[%c0_32, %c0_33, %c0_34] : memref<4x32x128xf32, #tpu.memory_space<vmem>>, vector<1x32x128xf32>
    %59 = vector.shape_cast %58 : vector<1x32x128xf32> to vector<32x128xf32>
    %60 = vector.shape_cast %57 : vector<32x128xf32> to vector<1x32x128xf32>
    tpu.vector_store %arg5[%c0_32, %c0_33, %c0_34], %60 {strides = array<i32>} : memref<4x32x128xf32, #tpu.memory_space<vmem>>, vector<1x32x128xf32>,
    %cst_35 = arith.constant dense<0.000000e+00> : vector<128xf32>
    %61 = vector.multi_reduction <add>, %57, %cst_35 [0] : vector<32x128xf32> to vector<128xf32>
    %62 = vector.shape_cast %61 : vector<128xf32> to vector<1x128xf32>
    %63 = arith.addf %30, %62 : vector<1x128xf32>
    %64 = arith.mulf %57, %57 : vector<32x128xf32>
    %cst_36 = arith.constant dense<0.000000e+00> : vector<128xf32>
    %65 = vector.multi_reduction <add>, %64, %cst_36 [0] : vector<32x128xf32> to vector<128xf32>
    %66 = vector.shape_cast %65 : vector<128xf32> to vector<1x128xf32>
    %67 = arith.addf %31, %66 : vector<1x128xf32>
    %c1_37 = arith.constant 1 : index
    %c0_38 = arith.constant 0 : index
    %c0_39 = arith.constant 0 : index
    %68 = vector.load %arg1[%c1_37, %c0_38, %c0_39] : memref<4x32x128xf32, #tpu.memory_space<vmem>>, vector<1x32x128xf32>
    %69 = vector.shape_cast %68 : vector<1x32x128xf32> to vector<32x128xf32>
    %70 = vector.broadcast %0 : vector<1x128xf32> to vector<32x128xf32>
    %71 = arith.mulf %69, %70 : vector<32x128xf32>
    %72 = vector.broadcast %1 : vector<1x128xf32> to vector<32x128xf32>
    %73 = arith.addf %71, %72 : vector<32x128xf32>
    %cst_40 = arith.constant 2.500000e-01 : f32
    %74 = vector.broadcast %cst_40 : f32 to vector<32x128xf32>
    %75 = arith.mulf %37, %74 : vector<32x128xf32>
    %cst_41 = arith.constant 1.000000e+00 : f32
    %76 = vector.broadcast %cst_41 : f32 to vector<32x128xf32>
    %77 = arith.subf %76, %41 : vector<32x128xf32>
    %78 = arith.mulf %75, %77 : vector<32x128xf32>
    %79 = arith.addf %78, %73 : vector<32x128xf32>
    %cst_42 = arith.constant 5.000000e-01 : f32
    %80 = vector.broadcast %cst_42 : f32 to vector<32x128xf32>
    %81 = arith.cmpf ogt, %79, %80 : vector<32x128xf32>
    %82 = arith.extui %81 : vector<32x128xi1> to vector<32x128xi32>
    %83 = arith.sitofp %82 : vector<32x128xi32> to vector<32x128xf32>
    %c1_43 = arith.constant 1 : index
    %c0_44 = arith.constant 0 : index
    %84 = vector.load %arg8[%c1_43, %c0_44] : memref<34x128xf32, #tpu.memory_space<vmem>>, vector<32x128xf32>
    tpu.vector_store %arg8[%c1_43, %c0_44], %83 {strides = array<i32>} : memref<34x128xf32, #tpu.memory_space<vmem>>, vector<32x128xf32>,
    %c1_45 = arith.constant 1 : index
    %c0_46 = arith.constant 0 : index
    %c0_47 = arith.constant 0 : index
    %85 = vector.load %arg2[%c1_45, %c0_46, %c0_47] : memref<3x128x128xf32, #tpu.memory_space<vmem>>, vector<1x128x128xf32>
    %86 = vector.shape_cast %85 : vector<1x128x128xf32> to vector<128x128xf32>
    %cst_48 = arith.constant dense<0.000000e+00> : vector<32x128xf32>
    %87 = tpu.matmul %83, %86, %cst_48 {dimension_numbers = #tpu.dot_dimension_numbers<[1], [0], [0], [1], [0, 0, 1, 1], [], []>} : vector<32x128xf32>, vector<128x128xf32>, vector<32x128xf32> -> vector<32x128xf32>
    %c0_49 = arith.constant 0 : index
    %c0_50 = arith.constant 0 : index
    %88 = vector.load %arg8[%c0_49, %c0_50] : memref<34x128xf32, #tpu.memory_space<vmem>>, vector<32x128xf32>
    %c0_51 = arith.constant 0 : index
    %c0_52 = arith.constant 0 : index
    %c0_53 = arith.constant 0 : index
    %89 = vector.load %arg2[%c0_51, %c0_52, %c0_53] : memref<3x128x128xf32, #tpu.memory_space<vmem>>, vector<1x128x128xf32>
    %90 = vector.shape_cast %89 : vector<1x128x128xf32> to vector<128x128xf32>
    %cst_54 = arith.constant dense<0.000000e+00> : vector<32x128xf32>
    %91 = tpu.matmul %88, %90, %cst_54 {dimension_numbers = #tpu.dot_dimension_numbers<[1], [0], [0], [1], [0, 0, 1, 1], [], []>} : vector<32x128xf32>, vector<128x128xf32>, vector<32x128xf32> -> vector<32x128xf32>
    %92 = arith.mulf %25, %91 : vector<32x128xf32>
    %93 = arith.addf %87, %92 : vector<32x128xf32>
    %c2_55 = arith.constant 2 : index
    %c0_56 = arith.constant 0 : index
    %94 = vector.load %arg8[%c2_55, %c0_56] : memref<34x128xf32, #tpu.memory_space<vmem>>, vector<32x128xf32>
    %c2_57 = arith.constant 2 : index
    %c0_58 = arith.constant 0 : index
    %c0_59 = arith.constant 0 : index
    %95 = vector.load %arg2[%c2_57, %c0_58, %c0_59] : memref<3x128x128xf32, #tpu.memory_space<vmem>>, vector<1x128x128xf32>
    %96 = vector.shape_cast %95 : vector<1x128x128xf32> to vector<128x128xf32>
    %cst_60 = arith.constant dense<0.000000e+00> : vector<32x128xf32>
    %97 = tpu.matmul %94, %96, %cst_60 {dimension_numbers = #tpu.dot_dimension_numbers<[1], [0], [0], [1], [0, 0, 1, 1], [], []>} : vector<32x128xf32>, vector<128x128xf32>, vector<32x128xf32> -> vector<32x128xf32>
    %98 = arith.mulf %29, %97 : vector<32x128xf32>
    %99 = arith.addf %93, %98 : vector<32x128xf32>
    %c1_61 = arith.constant 1 : index
    %c0_62 = arith.constant 0 : index
    %c0_63 = arith.constant 0 : index
    %100 = vector.load %arg5[%c1_61, %c0_62, %c0_63] : memref<4x32x128xf32, #tpu.memory_space<vmem>>, vector<1x32x128xf32>
    %101 = vector.shape_cast %100 : vector<1x32x128xf32> to vector<32x128xf32>
    %102 = vector.shape_cast %99 : vector<32x128xf32> to vector<1x32x128xf32>
    tpu.vector_store %arg5[%c1_61, %c0_62, %c0_63], %102 {strides = array<i32>} : memref<4x32x128xf32, #tpu.memory_space<vmem>>, vector<1x32x128xf32>,
    %cst_64 = arith.constant dense<0.000000e+00> : vector<128xf32>
    %103 = vector.multi_reduction <add>, %99, %cst_64 [0] : vector<32x128xf32> to vector<128xf32>
    %104 = vector.shape_cast %103 : vector<128xf32> to vector<1x128xf32>
    %105 = arith.addf %63, %104 : vector<1x128xf32>
    %106 = arith.mulf %99, %99 : vector<32x128xf32>
    %cst_65 = arith.constant dense<0.000000e+00> : vector<128xf32>
    %107 = vector.multi_reduction <add>, %106, %cst_65 [0] : vector<32x128xf32> to vector<128xf32>
    %108 = vector.shape_cast %107 : vector<128xf32> to vector<1x128xf32>
    %109 = arith.addf %67, %108 : vector<1x128xf32>
    %c2_66 = arith.constant 2 : index
    %c0_67 = arith.constant 0 : index
    %c0_68 = arith.constant 0 : index
    %110 = vector.load %arg1[%c2_66, %c0_67, %c0_68] : memref<4x32x128xf32, #tpu.memory_space<vmem>>, vector<1x32x128xf32>
    %111 = vector.shape_cast %110 : vector<1x32x128xf32> to vector<32x128xf32>
    %112 = vector.broadcast %0 : vector<1x128xf32> to vector<32x128xf32>
    %113 = arith.mulf %111, %112 : vector<32x128xf32>
    %114 = vector.broadcast %1 : vector<1x128xf32> to vector<32x128xf32>
    %115 = arith.addf %113, %114 : vector<32x128xf32>
    %cst_69 = arith.constant 2.500000e-01 : f32
    %116 = vector.broadcast %cst_69 : f32 to vector<32x128xf32>
    %117 = arith.mulf %79, %116 : vector<32x128xf32>
    %cst_70 = arith.constant 1.000000e+00 : f32
    %118 = vector.broadcast %cst_70 : f32 to vector<32x128xf32>
    %119 = arith.subf %118, %83 : vector<32x128xf32>
    %120 = arith.mulf %117, %119 : vector<32x128xf32>
    %121 = arith.addf %120, %115 : vector<32x128xf32>
    %cst_71 = arith.constant 5.000000e-01 : f32
    %122 = vector.broadcast %cst_71 : f32 to vector<32x128xf32>
    %123 = arith.cmpf ogt, %121, %122 : vector<32x128xf32>
    %124 = arith.extui %123 : vector<32x128xi1> to vector<32x128xi32>
    %125 = arith.sitofp %124 : vector<32x128xi32> to vector<32x128xf32>
    %c1_72 = arith.constant 1 : index
    %c0_73 = arith.constant 0 : index
    %126 = vector.load %arg8[%c1_72, %c0_73] : memref<34x128xf32, #tpu.memory_space<vmem>>, vector<32x128xf32>
    tpu.vector_store %arg8[%c1_72, %c0_73], %125 {strides = array<i32>} : memref<34x128xf32, #tpu.memory_space<vmem>>, vector<32x128xf32>,
    %c1_74 = arith.constant 1 : index
    %c0_75 = arith.constant 0 : index
    %c0_76 = arith.constant 0 : index
    %127 = vector.load %arg2[%c1_74, %c0_75, %c0_76] : memref<3x128x128xf32, #tpu.memory_space<vmem>>, vector<1x128x128xf32>
    %128 = vector.shape_cast %127 : vector<1x128x128xf32> to vector<128x128xf32>
    %cst_77 = arith.constant dense<0.000000e+00> : vector<32x128xf32>
    %129 = tpu.matmul %125, %128, %cst_77 {dimension_numbers = #tpu.dot_dimension_numbers<[1], [0], [0], [1], [0, 0, 1, 1], [], []>} : vector<32x128xf32>, vector<128x128xf32>, vector<32x128xf32> -> vector<32x128xf32>
    %c0_78 = arith.constant 0 : index
    %c0_79 = arith.constant 0 : index
    %130 = vector.load %arg8[%c0_78, %c0_79] : memref<34x128xf32, #tpu.memory_space<vmem>>, vector<32x128xf32>
    %c0_80 = arith.constant 0 : index
    %c0_81 = arith.constant 0 : index
    %c0_82 = arith.constant 0 : index
    %131 = vector.load %arg2[%c0_80, %c0_81, %c0_82] : memref<3x128x128xf32, #tpu.memory_space<vmem>>, vector<1x128x128xf32>
    %132 = vector.shape_cast %131 : vector<1x128x128xf32> to vector<128x128xf32>
    %cst_83 = arith.constant dense<0.000000e+00> : vector<32x128xf32>
    %133 = tpu.matmul %130, %132, %cst_83 {dimension_numbers = #tpu.dot_dimension_numbers<[1], [0], [0], [1], [0, 0, 1, 1], [], []>} : vector<32x128xf32>, vector<128x128xf32>, vector<32x128xf32> -> vector<32x128xf32>
    %134 = arith.mulf %25, %133 : vector<32x128xf32>
    %135 = arith.addf %129, %134 : vector<32x128xf32>
    %c2_84 = arith.constant 2 : index
    %c0_85 = arith.constant 0 : index
    %136 = vector.load %arg8[%c2_84, %c0_85] : memref<34x128xf32, #tpu.memory_space<vmem>>, vector<32x128xf32>
    %c2_86 = arith.constant 2 : index
    %c0_87 = arith.constant 0 : index
    %c0_88 = arith.constant 0 : index
    %137 = vector.load %arg2[%c2_86, %c0_87, %c0_88] : memref<3x128x128xf32, #tpu.memory_space<vmem>>, vector<1x128x128xf32>
    %138 = vector.shape_cast %137 : vector<1x128x128xf32> to vector<128x128xf32>
    %cst_89 = arith.constant dense<0.000000e+00> : vector<32x128xf32>
    %139 = tpu.matmul %136, %138, %cst_89 {dimension_numbers = #tpu.dot_dimension_numbers<[1], [0], [0], [1], [0, 0, 1, 1], [], []>} : vector<32x128xf32>, vector<128x128xf32>, vector<32x128xf32> -> vector<32x128xf32>
    %140 = arith.mulf %29, %139 : vector<32x128xf32>
    %141 = arith.addf %135, %140 : vector<32x128xf32>
    %c2_90 = arith.constant 2 : index
    %c0_91 = arith.constant 0 : index
    %c0_92 = arith.constant 0 : index
    %142 = vector.load %arg5[%c2_90, %c0_91, %c0_92] : memref<4x32x128xf32, #tpu.memory_space<vmem>>, vector<1x32x128xf32>
    %143 = vector.shape_cast %142 : vector<1x32x128xf32> to vector<32x128xf32>
    %144 = vector.shape_cast %141 : vector<32x128xf32> to vector<1x32x128xf32>
    tpu.vector_store %arg5[%c2_90, %c0_91, %c0_92], %144 {strides = array<i32>} : memref<4x32x128xf32, #tpu.memory_space<vmem>>, vector<1x32x128xf32>,
    %cst_93 = arith.constant dense<0.000000e+00> : vector<128xf32>
    %145 = vector.multi_reduction <add>, %141, %cst_93 [0] : vector<32x128xf32> to vector<128xf32>
    %146 = vector.shape_cast %145 : vector<128xf32> to vector<1x128xf32>
    %147 = arith.addf %105, %146 : vector<1x128xf32>
    %148 = arith.mulf %141, %141 : vector<32x128xf32>
    %cst_94 = arith.constant dense<0.000000e+00> : vector<128xf32>
    %149 = vector.multi_reduction <add>, %148, %cst_94 [0] : vector<32x128xf32> to vector<128xf32>
    %150 = vector.shape_cast %149 : vector<128xf32> to vector<1x128xf32>
    %151 = arith.addf %109, %150 : vector<1x128xf32>
    %c3 = arith.constant 3 : index
    %c0_95 = arith.constant 0 : index
    %c0_96 = arith.constant 0 : index
    %152 = vector.load %arg1[%c3, %c0_95, %c0_96] : memref<4x32x128xf32, #tpu.memory_space<vmem>>, vector<1x32x128xf32>
    %153 = vector.shape_cast %152 : vector<1x32x128xf32> to vector<32x128xf32>
    %154 = vector.broadcast %0 : vector<1x128xf32> to vector<32x128xf32>
    %155 = arith.mulf %153, %154 : vector<32x128xf32>
    %156 = vector.broadcast %1 : vector<1x128xf32> to vector<32x128xf32>
    %157 = arith.addf %155, %156 : vector<32x128xf32>
    %cst_97 = arith.constant 2.500000e-01 : f32
    %158 = vector.broadcast %cst_97 : f32 to vector<32x128xf32>
    %159 = arith.mulf %121, %158 : vector<32x128xf32>
    %cst_98 = arith.constant 1.000000e+00 : f32
    %160 = vector.broadcast %cst_98 : f32 to vector<32x128xf32>
    %161 = arith.subf %160, %125 : vector<32x128xf32>
    %162 = arith.mulf %159, %161 : vector<32x128xf32>
    %163 = arith.addf %162, %157 : vector<32x128xf32>
    %cst_99 = arith.constant 5.000000e-01 : f32
    %164 = vector.broadcast %cst_99 : f32 to vector<32x128xf32>
    %165 = arith.cmpf ogt, %163, %164 : vector<32x128xf32>
    %166 = arith.extui %165 : vector<32x128xi1> to vector<32x128xi32>
    %167 = arith.sitofp %166 : vector<32x128xi32> to vector<32x128xf32>
    %c1_100 = arith.constant 1 : index
    %c0_101 = arith.constant 0 : index
    %168 = vector.load %arg8[%c1_100, %c0_101] : memref<34x128xf32, #tpu.memory_space<vmem>>, vector<32x128xf32>
    tpu.vector_store %arg8[%c1_100, %c0_101], %167 {strides = array<i32>} : memref<34x128xf32, #tpu.memory_space<vmem>>, vector<32x128xf32>,
    %c1_102 = arith.constant 1 : index
    %c0_103 = arith.constant 0 : index
    %c0_104 = arith.constant 0 : index
    %169 = vector.load %arg2[%c1_102, %c0_103, %c0_104] : memref<3x128x128xf32, #tpu.memory_space<vmem>>, vector<1x128x128xf32>
    %170 = vector.shape_cast %169 : vector<1x128x128xf32> to vector<128x128xf32>
    %cst_105 = arith.constant dense<0.000000e+00> : vector<32x128xf32>
    %171 = tpu.matmul %167, %170, %cst_105 {dimension_numbers = #tpu.dot_dimension_numbers<[1], [0], [0], [1], [0, 0, 1, 1], [], []>} : vector<32x128xf32>, vector<128x128xf32>, vector<32x128xf32> -> vector<32x128xf32>
    %c0_106 = arith.constant 0 : index
    %c0_107 = arith.constant 0 : index
    %172 = vector.load %arg8[%c0_106, %c0_107] : memref<34x128xf32, #tpu.memory_space<vmem>>, vector<32x128xf32>
    %c0_108 = arith.constant 0 : index
    %c0_109 = arith.constant 0 : index
    %c0_110 = arith.constant 0 : index
    %173 = vector.load %arg2[%c0_108, %c0_109, %c0_110] : memref<3x128x128xf32, #tpu.memory_space<vmem>>, vector<1x128x128xf32>
    %174 = vector.shape_cast %173 : vector<1x128x128xf32> to vector<128x128xf32>
    %cst_111 = arith.constant dense<0.000000e+00> : vector<32x128xf32>
    %175 = tpu.matmul %172, %174, %cst_111 {dimension_numbers = #tpu.dot_dimension_numbers<[1], [0], [0], [1], [0, 0, 1, 1], [], []>} : vector<32x128xf32>, vector<128x128xf32>, vector<32x128xf32> -> vector<32x128xf32>
    %176 = arith.mulf %25, %175 : vector<32x128xf32>
    %177 = arith.addf %171, %176 : vector<32x128xf32>
    %c2_112 = arith.constant 2 : index
    %c0_113 = arith.constant 0 : index
    %178 = vector.load %arg8[%c2_112, %c0_113] : memref<34x128xf32, #tpu.memory_space<vmem>>, vector<32x128xf32>
    %c2_114 = arith.constant 2 : index
    %c0_115 = arith.constant 0 : index
    %c0_116 = arith.constant 0 : index
    %179 = vector.load %arg2[%c2_114, %c0_115, %c0_116] : memref<3x128x128xf32, #tpu.memory_space<vmem>>, vector<1x128x128xf32>
    %180 = vector.shape_cast %179 : vector<1x128x128xf32> to vector<128x128xf32>
    %cst_117 = arith.constant dense<0.000000e+00> : vector<32x128xf32>
    %181 = tpu.matmul %178, %180, %cst_117 {dimension_numbers = #tpu.dot_dimension_numbers<[1], [0], [0], [1], [0, 0, 1, 1], [], []>} : vector<32x128xf32>, vector<128x128xf32>, vector<32x128xf32> -> vector<32x128xf32>
    %182 = arith.mulf %29, %181 : vector<32x128xf32>
    %183 = arith.addf %177, %182 : vector<32x128xf32>
    %c3_118 = arith.constant 3 : index
    %c0_119 = arith.constant 0 : index
    %c0_120 = arith.constant 0 : index
    %184 = vector.load %arg5[%c3_118, %c0_119, %c0_120] : memref<4x32x128xf32, #tpu.memory_space<vmem>>, vector<1x32x128xf32>
    %185 = vector.shape_cast %184 : vector<1x32x128xf32> to vector<32x128xf32>
    %186 = vector.shape_cast %183 : vector<32x128xf32> to vector<1x32x128xf32>
    tpu.vector_store %arg5[%c3_118, %c0_119, %c0_120], %186 {strides = array<i32>} : memref<4x32x128xf32, #tpu.memory_space<vmem>>, vector<1x32x128xf32>,
    %cst_121 = arith.constant dense<0.000000e+00> : vector<128xf32>
    %187 = vector.multi_reduction <add>, %183, %cst_121 [0] : vector<32x128xf32> to vector<128xf32>
    %188 = vector.shape_cast %187 : vector<128xf32> to vector<1x128xf32>
    %189 = arith.addf %147, %188 : vector<1x128xf32>
    %190 = arith.mulf %183, %183 : vector<32x128xf32>
    %cst_122 = arith.constant dense<0.000000e+00> : vector<128xf32>
    %191 = vector.multi_reduction <add>, %190, %cst_122 [0] : vector<32x128xf32> to vector<128xf32>
    %192 = vector.shape_cast %191 : vector<128xf32> to vector<1x128xf32>
    %193 = arith.addf %151, %192 : vector<1x128xf32>
    %194 = vector.shape_cast %189 : vector<1x128xf32> to vector<1x1x128xf32>
    %c0_123 = arith.constant 0 : index
    %c0_124 = arith.constant 0 : index
    %c0_125 = arith.constant 0 : index
    %195 = vector.load %arg6[%c0_123, %c0_124, %c0_125] : memref<1x1x128xf32, #tpu.memory_space<vmem>>, vector<1x1x128xf32>
    tpu.vector_store %arg6[%c0_123, %c0_124, %c0_125], %194 {strides = array<i32>} : memref<1x1x128xf32, #tpu.memory_space<vmem>>, vector<1x1x128xf32>,
    %196 = vector.shape_cast %193 : vector<1x128xf32> to vector<1x1x128xf32>
    %c0_126 = arith.constant 0 : index
    %c0_127 = arith.constant 0 : index
    %c0_128 = arith.constant 0 : index
    %197 = vector.load %arg7[%c0_126, %c0_127, %c0_128] : memref<1x1x128xf32, #tpu.memory_space<vmem>>, vector<1x1x128xf32>
    tpu.vector_store %arg7[%c0_126, %c0_127, %c0_128], %196 {strides = array<i32>} : memref<1x1x128xf32, #tpu.memory_space<vmem>>, vector<1x1x128xf32>,
    return
  }
  func.func @transform_0(%arg0: i32) -> (i32, i32, i32) {
    %c0_i32 = arith.constant 0 : i32
    %c0_i32_0 = arith.constant 0 : i32
    %c0_i32_1 = arith.constant 0 : i32
    return %c0_i32, %arg0, %c0_i32_0 : i32, i32, i32
  }
  func.func @transform_1(%arg0: i32) -> (i32, i32, i32) {
    %c0_i32 = arith.constant 0 : i32
    %c0_i32_0 = arith.constant 0 : i32
    %c0_i32_1 = arith.constant 0 : i32
    %c0_i32_2 = arith.constant 0 : i32
    return %c0_i32, %c0_i32_0, %c0_i32_1 : i32, i32, i32
  }
  func.func @transform_2(%arg0: i32) -> (i32, i32) {
    %c0_i32 = arith.constant 0 : i32
    %c0_i32_0 = arith.constant 0 : i32
    %c0_i32_1 = arith.constant 0 : i32
    return %c0_i32, %c0_i32_0 : i32, i32
  }
  func.func @transform_3(%arg0: i32) -> (i32, i32) {
    %c0_i32 = arith.constant 0 : i32
    %c0_i32_0 = arith.constant 0 : i32
    %c0_i32_1 = arith.constant 0 : i32
    return %c0_i32, %c0_i32_0 : i32, i32
  }
  func.func @transform_4(%arg0: i32) -> (i32, i32, i32) {
    %c0_i32 = arith.constant 0 : i32
    %c0_i32_0 = arith.constant 0 : i32
    %c0_i32_1 = arith.constant 0 : i32
    return %c0_i32, %arg0, %c0_i32_0 : i32, i32, i32
  }
  func.func @transform_5(%arg0: i32) -> (i32, i32, i32) {
    %c0_i32 = arith.constant 0 : i32
    %c0_i32_0 = arith.constant 0 : i32
    %c0_i32_1 = arith.constant 0 : i32
    return %arg0, %c0_i32, %c0_i32_0 : i32, i32, i32
  }
  func.func @transform_6(%arg0: i32) -> (i32, i32, i32) {
    %c0_i32 = arith.constant 0 : i32
    %c0_i32_0 = arith.constant 0 : i32
    %c0_i32_1 = arith.constant 0 : i32
    return %arg0, %c0_i32, %c0_i32_0 : i32, i32, i32
  }
}

module attributes {stable_mosaic.version = 11 : i64} {
  func.func @_bn_add_kernel(%arg0: i32, %arg1: memref<128x128xf32, #tpu.memory_space<vmem>>, %arg2: memref<128x128xf32, #tpu.memory_space<vmem>>, %arg3: memref<1x128xf32, #tpu.memory_space<vmem>>, %arg4: memref<1x128xf32, #tpu.memory_space<vmem>>, %arg5: memref<128x128xf32, #tpu.memory_space<vmem>>) attributes {dimension_semantics = [#tpu.dimension_semantics<parallel>], iteration_bounds = array<i64: 1>, scalar_prefetch = 0 : i64, scratch_operands = 0 : i64, tpu.core_type = #tpu.core_type<tc>, window_params = [{transform_indices = @transform_0, window_bounds = array<i64: 128, 128>}, {transform_indices = @transform_1, window_bounds = array<i64: 128, 128>}, {pipeline_mode = #tpu.pipeline_mode<synchronous>, transform_indices = @transform_2, window_bounds = array<i64: 1, 128>}, {pipeline_mode = #tpu.pipeline_mode<synchronous>, transform_indices = @transform_3, window_bounds = array<i64: 1, 128>}, {transform_indices = @transform_4, window_bounds = array<i64: 128, 128>}]} {
    %c0 = arith.constant 0 : index
    %c0_0 = arith.constant 0 : index
    %0 = vector.load %arg1[%c0, %c0_0] : memref<128x128xf32, #tpu.memory_space<vmem>>, vector<128x128xf32>
    %c0_1 = arith.constant 0 : index
    %c0_2 = arith.constant 0 : index
    %1 = vector.load %arg3[%c0_1, %c0_2] : memref<1x128xf32, #tpu.memory_space<vmem>>, vector<1x128xf32>
    %2 = vector.broadcast %1 : vector<1x128xf32> to vector<128x128xf32>
    %3 = arith.mulf %0, %2 : vector<128x128xf32>
    %c0_3 = arith.constant 0 : index
    %c0_4 = arith.constant 0 : index
    %4 = vector.load %arg4[%c0_3, %c0_4] : memref<1x128xf32, #tpu.memory_space<vmem>>, vector<1x128xf32>
    %5 = vector.broadcast %4 : vector<1x128xf32> to vector<128x128xf32>
    %6 = arith.addf %3, %5 : vector<128x128xf32>
    %c0_5 = arith.constant 0 : index
    %c0_6 = arith.constant 0 : index
    %7 = vector.load %arg2[%c0_5, %c0_6] : memref<128x128xf32, #tpu.memory_space<vmem>>, vector<128x128xf32>
    %8 = arith.addf %6, %7 : vector<128x128xf32>
    %c0_7 = arith.constant 0 : index
    %c0_8 = arith.constant 0 : index
    %9 = vector.load %arg5[%c0_7, %c0_8] : memref<128x128xf32, #tpu.memory_space<vmem>>, vector<128x128xf32>
    tpu.vector_store %arg5[%c0_7, %c0_8], %8 {strides = array<i32>} : memref<128x128xf32, #tpu.memory_space<vmem>>, vector<128x128xf32>,
    return
  }
  func.func @transform_0(%arg0: i32) -> (i32, i32) {
    %c0_i32 = arith.constant 0 : i32
    %c0_i32_0 = arith.constant 0 : i32
    return %arg0, %c0_i32 : i32, i32
  }
  func.func @transform_1(%arg0: i32) -> (i32, i32) {
    %c0_i32 = arith.constant 0 : i32
    %c0_i32_0 = arith.constant 0 : i32
    return %arg0, %c0_i32 : i32, i32
  }
  func.func @transform_2(%arg0: i32) -> (i32, i32) {
    %c0_i32 = arith.constant 0 : i32
    %c0_i32_0 = arith.constant 0 : i32
    %c0_i32_1 = arith.constant 0 : i32
    return %c0_i32, %c0_i32_0 : i32, i32
  }
  func.func @transform_3(%arg0: i32) -> (i32, i32) {
    %c0_i32 = arith.constant 0 : i32
    %c0_i32_0 = arith.constant 0 : i32
    %c0_i32_1 = arith.constant 0 : i32
    return %c0_i32, %c0_i32_0 : i32, i32
  }
  func.func @transform_4(%arg0: i32) -> (i32, i32) {
    %c0_i32 = arith.constant 0 : i32
    %c0_i32_0 = arith.constant 0 : i32
    return %arg0, %c0_i32 : i32, i32
  }
}

</mosaic_0001>

<bundles_post_ra>
// kernel: tile.23
= control target key start
LH: loop header
LB: loop body
LE: loop exit
PB: predicated region body
PF: predicated region fallthrough
CT: control target
= control target key end

     0   :  { %s28_s0 = inlined_call_operand.vmem [shape: f32[8], index: 0, kind: input, shape index: {}]   ;;  %s29_s1 = inlined_call_operand.vmem [shape: f32[16,8], index: 1, kind: output, shape index: {}]  }
   0x1   :  { %v4_v0 = vld [vmem:[%s28_s0] ss:$0 sm:$0xff] }
   0x2   :  { %5 = vst [vmem:[%s29_s1] sm:$0xff] %v4_v0 }
   0x3   :  { %8 = vst [vmem:[%s29_s1 + $0x8] sm:$0xff] %v4_v0 }

// kernel: tile.24
= control target key start
LH: loop header
LB: loop body
LE: loop exit
PB: predicated region body
PF: predicated region fallthrough
CT: control target
= control target key end

     0   :  { %s131_s10 = smov 120   ;;  %s132_s11 = smov 104   ;;  %vm3_vm0 = vcmask 64512   ;;  %vm9_vm1 = vcmask 1048512   ;;  %vm15_vm2 = vcmask 982912   ;;  %vm21_vm3 = vcmask 917312   ;;  %s207_s0 = inlined_call_operand.vmem [shape: f32[16,8], index: 0, kind: input, shape index: {}]   ;;  %s208_s1 = inlined_call_operand.vmem [shape: f32[1,128], index: 1, kind: output, shape index: {}]  }
   0x1   :  { %v101_v0 = vld [vmem:[%s207_s0 + $0xf] sm:$0x1]   ;;  %v103_v1 = vld [vmem:[%s207_s0 + $0xd] sm:$0x1]   ;;  %v105_v2 = vld [vmem:[%s207_s0 + $0xb] sm:$0x1]  }
   0x2   :  { %7 = vrot.lane.b32.xlu0 %v101_v0, %s131_s10  ;;  %19 = vrot.lane.b32.xlu1 %v103_v1, %s132_s11  ;;  %s133_s14 = smov 88   ;;  %v102_v3 = vld [vmem:[%s207_s0 + $0xe] sm:$0x1]   ;;  %v104_v4 = vld [vmem:[%s207_s0 + $0xc] sm:$0x1]   ;;  %s134_s19 = smov 112  }
   0x3   :  { %31 = vrot.lane.b32.xlu2 %v105_v2, %s133_s14  ;;  %s135_s20 = smov 96   ;;  %v106_v5 = vld [vmem:[%s207_s0 + $0xa] sm:$0x1]   ;;  %s136_s23 = smov 80   ;;  %v107_v6 = vld [vmem:[%s207_s0 + $0x9] sm:$0x1]  }
   0x4   :  { %v108_v7 = vld [vmem:[%s207_s0 + $0x8] sm:$0x1]   ;;  %s137_s28 = smov 72   ;;  %s138_s29 = smov 64   ;;  %v109_v8 = vld [vmem:[%s207_s0 + $0x7] sm:$0x1]  }
   0x5   :  { %s139_s3 = smov 56   ;;  %v110_v9 = vld [vmem:[%s207_s0 + $0x6] sm:$0x1]   ;;  %v111_v10 = vld [vmem:[%s207_s0 + $0x5] sm:$0x1]   ;;  %s140_s8 = smov 48  }
   0x6   :  { %s141_s9 = smov 40   ;;  %v112_v11 = vld [vmem:[%s207_s0 + $0x4] sm:$0x1]   ;;  %s142_s12 = smov 32   ;;  %v113_v12 = vld [vmem:[%s207_s0 + $0x3] sm:$0x1]  }
   0x7   :  { %v114_v13 = vld [vmem:[%s207_s0 + $0x2] sm:$0x1]   ;;  %s143_s17 = smov 24   ;;  %s144_s18 = smov 16   ;;  %v115_v14 = vld [vmem:[%s207_s0 + $0x1] sm:$0x1]  }
   0x8   :  { %s145_s21 = smov 8   ;;  %v2_v15 = vld [vmem:[%s207_s0] sm:$0x1]   ;;  %vm27_vm4 = vcmask 851712   ;;  %vm33_vm5 = vcmask 786112   ;;  %vm39_vm6 = vcmask 720512  }
   0x9   :  { %4 = vst.msk [vmem:[#allocation0] sm:$0x1] %vm3_vm0, %v2_v15   ;;  %vm45_vm7 = vcmask 654912   ;;  %vm51_vm8 = vcmask 589312   ;;  %vm57_vm9 = vcmask 523712   ;;  %vm63_vm10 = vcmask 458112  }
   0xa   :  { %13 = vrot.lane.b32.xlu0 %v102_v3, %s134_s19  ;;  %25 = vrot.lane.b32.xlu1 %v104_v4, %s135_s20  ;;  %vm69_vm11 = vcmask 392512   ;;  %vm75_vm12 = vcmask 326912   ;;  %vm81_vm13 = vcmask 261312   ;;  %vm87_vm14 = vcmask 195712  }
   0xb   :  { %37 = vrot.lane.b32.xlu2 %v106_v5, %s136_s23  ;;  %vm93_vm15 = vcmask 130112  }
  0x12   :  { %43 = vrot.lane.b32.xlu0 %v107_v6, %s137_s28  ;;  %49 = vrot.lane.b32.xlu1 %v108_v7, %s138_s29 }
  0x13   :  { %55 = vrot.lane.b32.xlu2 %v109_v8, %s139_s3 }
  0x1a   :  { %61 = vrot.lane.b32.xlu0 %v110_v9, %s140_s8  ;;  %67 = vrot.lane.b32.xlu1 %v111_v10, %s141_s9 }
  0x1b   :  { %73 = vrot.lane.b32.xlu2 %v112_v11, %s142_s12 }
  0x22   :  { %79 = vrot.lane.b32.xlu0 %v113_v12, %s143_s17  ;;  %85 = vrot.lane.b32.xlu1 %v114_v13, %s144_s18 }
  0x23   :  { %91 = vrot.lane.b32.xlu2 %v115_v14, %s145_s21 }
  0x5d   :  { %v32_v16 = vpop.permute.xlu2 %31  }
  0x65   :  { %v38_v17 = vpop.permute.xlu2 %37  }
  0x6d   :  { %v56_v18 = vpop.permute.xlu2 %55  }
  0x74   :  { %v8_v19 = vpop.permute.xlu0 %7   ;;  %v20_v20 = vpop.permute.xlu1 %19  }
  0x75   :  { %10 = vst.msk [vmem:[#allocation0] sm:$0x1] %vm9_vm1, %v8_v19   ;;  %v74_v21 = vpop.permute.xlu2 %73  }
  0x7c   :  { %v14_v22 = vpop.permute.xlu0 %13   ;;  %v26_v23 = vpop.permute.xlu1 %25  }
  0x7d   :  { %16 = vst.msk [vmem:[#allocation0] sm:$0x1] %vm15_vm2, %v14_v22   ;;  %v92_v24 = vpop.permute.xlu2 %91  }
  0x7e   :  { %22 = vst.msk [vmem:[#allocation0] sm:$0x1] %vm21_vm3, %v20_v20  }
  0x7f   :  { %28 = vst.msk [vmem:[#allocation0] sm:$0x1] %vm27_vm4, %v26_v23  }
  0x80   :  { %34 = vst.msk [vmem:[#allocation0] sm:$0x1] %vm33_vm5, %v32_v16  }
  0x81   :  { %40 = vst.msk [vmem:[#allocation0] sm:$0x1] %vm39_vm6, %v38_v17  }
  0x84   :  { %v44_v25 = vpop.permute.xlu0 %43   ;;  %v50_v26 = vpop.permute.xlu1 %49  }
  0x85   :  { %46 = vst.msk [vmem:[#allocation0] sm:$0x1] %vm45_vm7, %v44_v25  }
  0x86   :  { %52 = vst.msk [vmem:[#allocation0] sm:$0x1] %vm51_vm8, %v50_v26  }
  0x87   :  { %58 = vst.msk [vmem:[#allocation0] sm:$0x1] %vm57_vm9, %v56_v18  }
  0x8c   :  { %v62_v27 = vpop.permute.xlu0 %61   ;;  %v68_v28 = vpop.permute.xlu1 %67  }
  0x8d   :  { %64 = vst.msk [vmem:[#allocation0] sm:$0x1] %vm63_vm10, %v62_v27  }
  0x8e   :  { %70 = vst.msk [vmem:[#allocation0] sm:$0x1] %vm69_vm11, %v68_v28  }
  0x8f   :  { %76 = vst.msk [vmem:[#allocation0] sm:$0x1] %vm75_vm12, %v74_v21  }
  0x94   :  { %v80_v29 = vpop.permute.xlu0 %79   ;;  %v86_v30 = vpop.permute.xlu1 %85  }
  0x95   :  { %82 = vst.msk [vmem:[#allocation0] sm:$0x1] %vm81_vm13, %v80_v29  }
  0x96   :  { %88 = vst.msk [vmem:[#allocation0] sm:$0x1] %vm87_vm14, %v86_v30  }
  0x97   :  { %94 = vst.msk [vmem:[#allocation0] sm:$0x1] %vm93_vm15, %v92_v24  }
  0x9e   :  { %v97_v31 = vld [vmem:[#allocation0] sm:$0x1] }
  0x9f   :  { %100 = vst [vmem:[%s208_s1] sm:$0x1] %v97_v31 }

// kernel: basic_block.3
= control target key start
LH: loop header
LB: loop body
LE: loop exit
PB: predicated region body
PF: predicated region fallthrough
CT: control target
= control target key end

     0   :  { %v2073_v3 = vmov 0.0   ;;  %s2066_s1 = inlined_call_operand.vmem [shape: f32[3,128,128], index: 1, kind: input, shape index: {}]   ;;  %s2067_s0 = inlined_call_operand.vmem [shape: f32[4,32,128], index: 0, kind: input, shape index: {}]   ;;  %s2068_s2 = inlined_call_operand.vmem [shape: f32[1,128], index: 2, kind: input, shape index: {}]   ;;  %s2069_s3 = inlined_call_operand.vmem [shape: f32[1,128], index: 3, kind: input, shape index: {}]   ;;  %s2070_s4 = inlined_call_operand.vmem [shape: f32[4,32,128], index: 4, kind: output, shape index: {0}]   ;;  %s2071_s5 = inlined_call_operand.vmem [shape: f32[1,1,128], index: 5, kind: output, shape index: {1}]   ;;  %s2072_s6 = inlined_call_operand.vmem [shape: f32[1,1,128], index: 6, kind: output, shape index: {2}]  }
   0x1   :  { %v1253_v0 = vld [vmem:[%s2066_s1 + $0x78] sm:$0xff]  ;;  %22 = vst [vmem:[#allocation2] sm:$0x1] %v2073_v3  ;;  %v1271_v4 = vld [vmem:[%s2066_s1 + $0x70] sm:$0xff]  ;;  %v1289_v7 = vld [vmem:[%s2066_s1 + $0x68] sm:$0xff] }
   0x2   :  { %v1258_v1 = vld [vmem:[%s2066_s1 + $0xf8] sm:$0xff]  ;;  %172 = vmatpush.msra.mxu0 %v1253_v0  ;;  %v1276_v5 = vld [vmem:[%s2066_s1 + $0xf0] sm:$0xff]  ;;  %23 = vst [vmem:[#allocation2 + $0x21] sm:$0x1] %v2073_v3  ;;  %401 = vmatpush.msra.mxu3 %v1253_v0  ;;  %v1294_v8 = vld [vmem:[%s2066_s1 + $0xe8] sm:$0xff] }
   0x3   :  { %v1263_v2 = vld [vmem:[%s2066_s1 + $0x178] sm:$0xff]  ;;  %205 = vmatpush.msra.mxu1 %v1258_v1  ;;  %v1281_v6 = vld [vmem:[%s2066_s1 + $0x170] sm:$0xff]  ;;  %v1301_v9 = vld [vmem:[%s2066_s1 + $0x168] sm:$0xff] }
   0x4   :  { %255 = vmatpush.msra.mxu2 %v1263_v2  ;;  %173 = vmatpush.msra.mxu0 %v1271_v4  ;;  %v1308_v10 = vld [vmem:[%s2066_s1 + $0x60] sm:$0xff]  ;;  %v1327_v13 = vld [vmem:[%s2066_s1 + $0x58] sm:$0xff]  ;;  %v1346_v16 = vld [vmem:[%s2066_s1 + $0x50] sm:$0xff] }
   0x5   :  { %206 = vmatpush.msra.mxu1 %v1276_v5  ;;  %402 = vmatpush.msra.mxu3 %v1271_v4  ;;  %v1313_v11 = vld [vmem:[%s2066_s1 + $0xe0] sm:$0xff]  ;;  %v1332_v14 = vld [vmem:[%s2066_s1 + $0xd8] sm:$0xff]  ;;  %2114 = vst [vmem:[#allocation3_spill] sm:$0xff] %v1346_v16  ;;  %v1351_v17 = vld [vmem:[%s2066_s1 + $0xd0] sm:$0xff] }
   0x6   :  { %256 = vmatpush.msra.mxu2 %v1281_v6  ;;  %174 = vmatpush.msra.mxu0 %v1289_v7  ;;  %v1320_v12 = vld [vmem:[%s2066_s1 + $0x160] sm:$0xff]  ;;  %v1339_v15 = vld [vmem:[%s2066_s1 + $0x158] sm:$0xff]  ;;  %v1358_v18 = vld [vmem:[%s2066_s1 + $0x150] sm:$0xff] }
   0x7   :  { %207 = vmatpush.msra.mxu1 %v1294_v8  ;;  %403 = vmatpush.msra.mxu3 %v1289_v7  ;;  %v1365_v19 = vld [vmem:[%s2066_s1 + $0x48] sm:$0xff]  ;;  %v1384_v22 = vld [vmem:[%s2066_s1 + $0x40] sm:$0xff]  ;;  %v1403_v25 = vld [vmem:[%s2066_s1 + $0x38] sm:$0xff] }
   0x8   :  { %257 = vmatpush.msra.mxu2 %v1301_v9  ;;  %175 = vmatpush.msra.mxu0 %v1308_v10  ;;  %2115 = vst [vmem:[#allocation4_spill] sm:$0xff] %v1365_v19  ;;  %v1370_v20 = vld [vmem:[%s2066_s1 + $0xc8] sm:$0xff]  ;;  %v1389_v23 = vld [vmem:[%s2066_s1 + $0xc0] sm:$0xff]  ;;  %v1408_v26 = vld [vmem:[%s2066_s1 + $0xb8] sm:$0xff] }
   0x9   :  { %208 = vmatpush.msra.mxu1 %v1313_v11  ;;  %404 = vmatpush.msra.mxu3 %v1308_v10  ;;  %v1377_v21 = vld [vmem:[%s2066_s1 + $0x148] sm:$0xff]  ;;  %2116 = vst [vmem:[#allocation5_spill] sm:$0xff] %v1384_v22  ;;  %v1396_v24 = vld [vmem:[%s2066_s1 + $0x140] sm:$0xff]  ;;  %v1413_v27 = vld [vmem:[%s2066_s1 + $0x138] sm:$0xff] }
   0xa   :  { %258 = vmatpush.msra.mxu2 %v1320_v12  ;;  %176 = vmatpush.msra.mxu0 %v1327_v13  ;;  %2117 = vst [vmem:[#allocation6_spill] sm:$0xff] %v1389_v23  ;;  %v1420_v28 = vld [vmem:[%s2066_s1 + $0x30] sm:$0xff]  ;;  %v1437_v31 = vld [vmem:[%s2066_s1 + $0x28] sm:$0xff]  ;;  %v101_v32 = vld [vmem:[%s2067_s0] sm:$0xff] }
   0xb   :  { %209 = vmatpush.msra.mxu1 %v1332_v14  ;;  %405 = vmatpush.msra.mxu3 %v1327_v13  ;;  %2118 = vst [vmem:[#allocation7_spill] sm:$0xff] %v1396_v24  ;;  %v1425_v29 = vld [vmem:[%s2066_s1 + $0xb0] sm:$0xff]  ;;  %v102_v33 = vld [vmem:[%s2067_s0 + $0x8] sm:$0xff]  ;;  %v1450_v34 = vld [vmem:[%s2068_s2] ss:$0 sm:$0xff] }
   0xc   :  { %259 = vmatpush.msra.mxu2 %v1339_v15  ;;  %177 = vmatpush.msra.mxu0 %v1346_v16  ;;  %v1430_v30 = vld [vmem:[%s2066_s1 + $0x130] sm:$0xff]  ;;  %v1455_v35 = vld [vmem:[%s2069_s3] ss:$0 sm:$0xff]  ;;  %v1462_v36 = vld [vmem:[%s2066_s1 + $0xa8] sm:$0xff]  ;;  %v108_v40 = vmul.f32 %v1450_v34, %v101_v32  ;;  %v109_v41 = vmul.f32 %v1450_v34, %v102_v33 }
   0xd   :  { %210 = vmatpush.msra.mxu1 %v1351_v17  ;;  %406 = vmatpush.msra.mxu3 %v1346_v16  ;;  %v1065_v37 = vld [vmem:[%s2067_s0 + $0x20] sm:$0xff]  ;;  %v103_v38 = vld [vmem:[%s2067_s0 + $0x10] sm:$0xff]  ;;  %v1475_v39 = vld [vmem:[%s2066_s1 + $0x128] sm:$0xff] }
   0xe   :  { %260 = vmatpush.msra.mxu2 %v1358_v18  ;;  %178 = vmatpush.msra.mxu0 %v1365_v19  ;;  %v1066_v42 = vld [vmem:[%s2067_s0 + $0x28] sm:$0xff]  ;;  %v1487_v43 = vld [vmem:[%s2066_s1 + $0x20] sm:$0xff]  ;;  %v325_v45 = vmul.f32 %v1450_v34, %v1065_v37  ;;  %v110_v46 = vmul.f32 %v1450_v34, %v103_v38  ;;  %v1506_v48 = vld [vmem:[%s2066_s1 + $0x18] sm:$0xff]  ;;  %v1509_v49 = vadd.f32 %v1455_v35, %v108_v40 }
   0xf   :  { %211 = vmatpush.msra.mxu1 %v1370_v20  ;;  %407 = vmatpush.msra.mxu3 %v1365_v19  ;;  %v1492_v44 = vld [vmem:[%s2066_s1 + $0xa0] sm:$0xff]  ;;  %2119 = vst [vmem:[#allocation8_spill] sm:$0xff] %v1506_v48  ;;  %v1512_v50 = vadd.f32 %v1455_v35, %v109_v41  ;;  %v326_v51 = vmul.f32 %v1450_v34, %v1066_v42  ;;  %v1520_v52 = vld [vmem:[%s2066_s1 + $0x98] sm:$0xff]  ;;  %v1067_v59 = vld [vmem:[%s2067_s0 + $0x30] sm:$0xff] }
  0x10   :  { %261 = vmatpush.msra.mxu2 %v1377_v21  ;;  %179 = vmatpush.msra.mxu0 %v1384_v22  ;;  %v1501_v47 = vld [vmem:[%s2066_s1 + $0x120] sm:$0xff]  ;;  %2120 = vst [vmem:[#allocation9_spill] sm:$0xff] %v1520_v52  ;;  %v1525_v53 = vld [vmem:[%s2066_s1 + $0x118] sm:$0xff]  ;;  %v1531_v55 = vadd.f32 %v1455_v35, %v110_v46  ;;  %vm119_vm0 = vcmp.gt.f32.partialorder %v1509_v49, 0.5  ;;  %v333_v56 = vmul.f32 0.25, %v1509_v49  ;;  %v1550_v60 = vld [vmem:[%s2066_s1 + $0x10] sm:$0xff]  ;;  %v329_v32 = vadd.f32 %v1455_v35, %v325_v45 }
  0x11   :  { %212 = vmatpush.msra.mxu1 %v1389_v23  ;;  %408 = vmatpush.msra.mxu3 %v1384_v22  ;;  %2121 = vst [vmem:[#allocation10_spill] sm:$0xff] %v1525_v53  ;;  %v1113_v54 = vld [vmem:[%s2067_s0 + $0x40] sm:$0xff]  ;;  %vm120_vm1 = vcmp.gt.f32.partialorder %v1512_v50, 0.5  ;;  %v334_v57 = vmul.f32 0.25, %v1512_v50  ;;  %v104_v58 = vld [vmem:[%s2067_s0 + $0x18] sm:$0xff]  ;;  %v1555_v61 = vld [vmem:[%s2066_s1 + $0x90] sm:$0xff]  ;;  %v330_v40 = vadd.f32 %v1455_v35, %v326_v51 }
  0x12   :  { %262 = vmatpush.msra.mxu2 %v1396_v24  ;;  %180 = vmatpush.msra.mxu0 %v1403_v25  ;;  %2122 = vst [vmem:[#allocation11_spill] sm:$0xff] %v1550_v60  ;;  %v1025_v62 = vsel %vm119_vm0, 1.0, %v2073_v3  ;;  %v1026_v63 = vsel %vm120_vm1, 1.0, %v2073_v3  ;;  %vm121_vm2 = vcmp.gt.f32.partialorder %v1531_v55, 0.5  ;;  %v1570_v33 = vld [vmem:[%s2066_s1 + $0x110] sm:$0xff]  ;;  %v1581_v42 = vld [vmem:[%s2066_s1 + $0x8] sm:$0xff]  ;;  %v554_v46 = vmul.f32 %v1450_v34, %v1113_v54 }
  0x13   :  { %213 = vmatpush.msra.mxu1 %v1408_v26  ;;  %409 = vmatpush.msra.mxu3 %v1403_v25  ;;  %2123 = vst [vmem:[#allocation12_spill] sm:$0xff] %v1555_v61  ;;  %v337_v37 = vsub.f32 1.0, %v1025_v62  ;;  %v1027_v38 = vsel %vm121_vm2, 1.0, %v2073_v3  ;;  %v338_v41 = vsub.f32 1.0, %v1026_v63  ;;  %v1586_v45 = vld [vmem:[%s2066_s1 + $0x88] sm:$0xff]  ;;  %v327_v3 = vmul.f32 %v1450_v34, %v1067_v59  ;;  %v1614_v59 = vld [vmem:[%s2066_s1 + $0x80] sm:$0xff] }
  0x14   :  { %263 = vmatpush.msra.mxu2 %v1413_v27  ;;  %181 = vmatpush.msra.mxu0 %v1420_v28  ;;  %2124 = vst [vmem:[#allocation13_spill] sm:$0xff] %v1570_v33  ;;  %v1114_v51 = vld [vmem:[%s2067_s0 + $0x48] sm:$0xff] }
  0x15   :  { %214 = vmatpush.msra.mxu1 %v1425_v29  ;;  %410 = vmatpush.msra.mxu3 %v1420_v28  ;;  %131 = vst [vmem:[#allocation2 + $0x1] sm:$0xff] %v1025_v62  ;;  %v111_v62 = vmul.f32 %v1450_v34, %v104_v58  ;;  %v342_v54 = vmul.f32 %v338_v41, %v334_v57  ;;  %v1609_v58 = vld [vmem:[%s2066_s1] sm:$0xff]  ;;  %v339_v41 = vsub.f32 1.0, %v1027_v38 }
  0x16   :  { %264 = vmatpush.msra.mxu2 %v1430_v30  ;;  %182 = vmatpush.msra.mxu0 %v1437_v31  ;;  %2125 = vst [vmem:[#allocation14_spill] sm:$0xff] %v1581_v42  ;;  %v331_v57 = vadd.f32 %v1455_v35, %v327_v3  ;;  %v558_v3 = vadd.f32 %v1455_v35, %v554_v46 }
  0x17   :  { %215 = vmatpush.msra.mxu1 %v1462_v36  ;;  %411 = vmatpush.msra.mxu3 %v1437_v31  ;;  %2126 = vst [vmem:[#allocation15_spill] sm:$0xff] %v1586_v45 }
  0x18   :  { %265 = vmatpush.msra.mxu2 %v1475_v39  ;;  %183 = vmatpush.msra.mxu0 %v1487_v43  ;;  %132 = vst [vmem:[#allocation2 + $0x9] sm:$0xff] %v1026_v63  ;;  %v341_v63 = vmul.f32 %v337_v37, %v333_v56  ;;  %v1617_v56 = vadd.f32 %v1455_v35, %v111_v62  ;;  %v335_v37 = vmul.f32 0.25, %v1531_v55 }
  0x19   :  { %216 = vmatpush.msra.mxu1 %v1492_v44  ;;  %412 = vmatpush.msra.mxu3 %v1487_v43  ;;  %133 = vst [vmem:[#allocation2 + $0x11] sm:$0xff] %v1027_v38  ;;  %v555_v62 = vmul.f32 %v1450_v34, %v1114_v51 }
  0x1a   :  { %266 = vmatpush.msra.mxu2 %v1501_v47  ;;  %184 = vmatpush.msra.mxu0 %v1506_v48  ;;  %2128 = vst [vmem:[#allocation17_spill] sm:$0xff] %v1609_v58  ;;  %vm122_vm3 = vcmp.gt.f32.partialorder %v1617_v56, 0.5  ;;  %v343_v38 = vmul.f32 %v339_v41, %v335_v37 }
  0x1b   :  { %217 = vmatpush.msra.mxu1 %v1520_v52  ;;  %413 = vmatpush.msra.mxu3 %v1506_v48  ;;  %v1068_v48 = vld [vmem:[%s2067_s0 + $0x38] sm:$0xff]  ;;  %2129 = vst [vmem:[#allocation18_spill] sm:$0xff] %v1614_v59 }
  0x1c   :  { %267 = vmatpush.msra.mxu2 %v1525_v53  ;;  %185 = vmatpush.msra.mxu0 %v1550_v60  ;;  %v1599_v53 = vld [vmem:[%s2066_s1 + $0x108] sm:$0xff]  ;;  %v152_v51 = vld [vmem:[#allocation2] sm:$0xff]  ;;  %v1658_v41 = vadd.f32 %v343_v38, %v331_v57 }
  0x1d   :  { %218 = vmatpush.msra.mxu1 %v1555_v61  ;;  %2127 = vst [vmem:[#allocation16_spill] sm:$0xff] %v1599_v53  ;;  %414 = vmatpush.msra.mxu3 %v1550_v60  ;;  %v1628_v61 = vadd.f32 %v341_v63, %v329_v32  ;;  %v1630_v60 = vadd.f32 %v342_v54, %v330_v40  ;;  %v2133_v63 = vmov 0.0  }
  0x1e   :  { %268 = vmatpush.msra.mxu2 %v1570_v33  ;;  %186 = vmatpush.msra.mxu0 %v1581_v42  ;;  %v1626_v33 = vld [vmem:[%s2066_s1 + $0x100] sm:$0xff]  ;;  %v328_v32 = vmul.f32 %v1450_v34, %v1068_v48  ;;  %v1028_v37 = vsel %vm122_vm3, 1.0, %v2133_v63  ;;  %2134 = vst [vmem:[#allocation22_spill] sm:$0xff] %v1658_v41  ;;  %vm351_vm6 = vcmp.gt.f32.partialorder %v1658_v41, 0.5 }
  0x1f   :  { %219 = vmatpush.msra.mxu1 %v1586_v45  ;;  %2130 = vst [vmem:[#allocation19_spill] sm:$0xff] %v1626_v33  ;;  %415 = vmatpush.msra.mxu3 %v1581_v42  ;;  %v1115_v45 = vld [vmem:[%s2067_s0 + $0x50] sm:$0xff]  ;;  %vm349_vm4 = vcmp.gt.f32.partialorder %v1628_v61, 0.5  ;;  %v562_v40 = vmul.f32 0.25, %v1628_v61  ;;  %vm350_vm5 = vcmp.gt.f32.partialorder %v1630_v60, 0.5  ;;  %v563_v46 = vmul.f32 0.25, %v1630_v60 }
  0x20   :  { %2131 = vst [vmem:[#allocation20_spill] sm:$0xff] %v1628_v61  ;;  %269 = vmatpush.msra.mxu2 %v1599_v53  ;;  %187 = vmatpush.msra.mxu0 %v1609_v58  ;;  %v1069_v48 = vsel %vm349_vm4, 1.0, %v2133_v63  ;;  %v1070_v54 = vsel %vm350_vm5, 1.0, %v2133_v63  ;;  %v559_v61 = vadd.f32 %v1455_v35, %v555_v62  ;;  %v1666_v57 = vld [vmem:[#allocation2 + $0x10] sm:$0xff]  ;;  %v332_v49 = vadd.f32 %v1455_v35, %v328_v32 }
  0x21   :  { %2132 = vst [vmem:[#allocation21_spill] sm:$0xff] %v1630_v60  ;;  %220 = vmatpush.msra.mxu1 %v1614_v59  ;;  %416 = vmatpush.msra.mxu3 %v1609_v58  ;;  %v153_v59 = vld [vmem:[#allocation2 + $0x8] sm:$0xff]  ;;  %v566_v53 = vsub.f32 1.0, %v1069_v48  ;;  %v2099_v58 = vmov 1.0   ;;  %v567_v42 = vsub.f32 1.0, %v1070_v54  ;;  %v556_v60 = vmul.f32 %v1450_v34, %v1115_v45 }
  0x22   :  { %270 = vmatpush.msra.mxu2 %v1626_v33  ;;  %188 = vmatmul.f32.vlgmr.msra.gmra.mxu0 %v152_v51  ;;  %v234_v33 = vld [vmem:[#allocation2 + $0x2] sm:$0xff]  ;;  %134 = vst [vmem:[#allocation2 + $0x19] sm:$0xff] %v1028_v37  ;;  %v235_v38 = vld [vmem:[#allocation2 + $0xa] sm:$0xff]  ;;  %v564_v51 = vmul.f32 0.25, %v1658_v41  ;;  %v1071_v45 = vsel %vm351_vm6, 1.0, %v2133_v63 }
  0x23   :  { %1045 = vmatmul.msk.f32.vlgmr.msra.gmra.mxu1 %vm119_vm0, %v2099_v58  ;;  %361 = vst [vmem:[#allocation2 + $0x1] sm:$0xff] %v1069_v48  ;;  %271 = vmatmul.f32.vlgmr.msra.gmra.mxu2 %v234_v33  ;;  %v336_v58 = vmul.f32 0.25, %v1617_v56  ;;  %v570_v62 = vmul.f32 %v566_v53, %v562_v40  ;;  %v571_v33 = vmul.f32 %v567_v42, %v563_v46  ;;  %v340_v48 = vsub.f32 1.0, %v1028_v37  ;;  %v1116_v53 = vld [vmem:[%s2067_s0 + $0x58] sm:$0xff]  ;;  %v2143_v56 = vld [vmem:[#allocation10_spill] sm:$0xff] }
  0x24   :  { %663 = vmatpush.msrb.mxu3 %v1258_v1  ;;  %630 = vmatpush.msrb.mxu2 %v1253_v0  ;;  %362 = vst [vmem:[#allocation2 + $0x9] sm:$0xff] %v1070_v54  ;;  %v568_v52 = vsub.f32 1.0, %v1071_v45  ;;  %v560_v40 = vadd.f32 %v1455_v35, %v556_v60  ;;  %v557_v37 = vmul.f32 %v1450_v34, %v1116_v53  ;;  %v2136_v53 = vmov 1.0  }
  0x25   :  { %434 = vmatpush.msrb.mxu0 %v1258_v1  ;;  %483 = vmatpush.msrb.mxu1 %v1263_v2  ;;  %v1682_v32 = vadd.f32 %v570_v62, %v558_v3  ;;  %v344_v42 = vmul.f32 %v340_v48, %v336_v58  ;;  %v1692_v3 = vadd.f32 %v571_v33, %v559_v61 }
  0x26   :  { %664 = vmatpush.msrb.mxu3 %v1276_v5  ;;  %631 = vmatpush.msrb.mxu2 %v1271_v4  ;;  %v572_v46 = vmul.f32 %v568_v52, %v564_v51 }
  0x27   :  { %435 = vmatpush.msrb.mxu0 %v1276_v5  ;;  %484 = vmatpush.msrb.mxu1 %v1281_v6  ;;  %vm578_vm7 = vcmp.gt.f32.partialorder %v1682_v32, 0.5  ;;  %v1694_v54 = vadd.f32 %v344_v42, %v332_v49  ;;  %vm579_vm9 = vcmp.gt.f32.partialorder %v1692_v3, 0.5  ;;  %v561_v42 = vadd.f32 %v1455_v35, %v557_v37 }
  0x28   :  { %665 = vmatpush.msrb.mxu3 %v1294_v8  ;;  %632 = vmatpush.msrb.mxu2 %v1289_v7  ;;  %v1706_v51 = vsel %vm578_vm7, 1.0, %v2133_v63  ;;  %v1713_v62 = vadd.f32 %v572_v46, %v560_v40  ;;  %v1118_v50 = vsel %vm579_vm9, 1.0, %v2133_v63 }
  0x29   :  { %436 = vmatpush.msrb.mxu0 %v1294_v8  ;;  %2135 = vst [vmem:[#allocation23_spill] sm:$0xff] %v1694_v54  ;;  %485 = vmatpush.msrb.mxu1 %v1301_v9  ;;  %v1699_v58 = vld [vmem:[#allocation2 + $0x18] sm:$0xff]  ;;  %vm352_vm8 = vcmp.gt.f32.partialorder %v1694_v54, 0.5  ;;  %v565_v49 = vmul.f32 0.25, %v1694_v54 }
  0x2a   :  { %666 = vmatpush.msrb.mxu3 %v1313_v11  ;;  %v236_v60 = vld [vmem:[#allocation2 + $0x12] sm:$0xff]  ;;  %v1701_v52 = vld [vmem:[#allocation2 + $0x1a] sm:$0xff]  ;;  %633 = vmatpush.msrb.mxu2 %v1308_v10  ;;  %v1072_v33 = vsel %vm352_vm8, 1.0, %v2133_v63  ;;  %vm580_vm10 = vcmp.gt.f32.partialorder %v1713_v62, 0.5  ;;  %v793_v41 = vmul.f32 0.25, %v1713_v62 }
  0x2b   :  { %v381_v61 = vld [vmem:[#allocation2] sm:$0xff]  ;;  %437 = vmatpush.msrb.mxu0 %v1313_v11  ;;  %363 = vst [vmem:[#allocation2 + $0x11] sm:$0xff] %v1071_v45  ;;  %486 = vmatpush.msrb.mxu1 %v1320_v12  ;;  %v382_v45 = vld [vmem:[#allocation2 + $0x8] sm:$0xff]  ;;  %v1119_v37 = vsel %vm580_vm10, 1.0, %v2133_v63 }
  0x2c   :  { %417 = vmatmul.f32.vlgmr.msra.gmra.mxu3 %v381_v61  ;;  %v1718_v48 = vld [vmem:[#allocation2 + $0x2] sm:$0xff]  ;;  %191 = vmatmul.f32.gmra.mxu0 %v153_v59  ;;  %364 = vst [vmem:[#allocation2 + $0x19] sm:$0xff] %v1072_v33  ;;  %v569_v61 = vsub.f32 1.0, %v1072_v33  ;;  %v1163_v33 = vld [vmem:[%s2067_s0 + $0x70] sm:$0xff] }
  0x2d   :  { %1046 = vmatmul.msk.f32.gmra.mxu1 %vm120_vm1, %v2136_v53  ;;  %274 = vmatmul.f32.gmra.mxu2 %v235_v38  ;;  %590 = vst [vmem:[#allocation2 + $0x1] sm:$0xff] %v1706_v51 }
  0x2e   :  { %667 = vmatpush.msrb.mxu3 %v1332_v14  ;;  %634 = vmatpush.msrb.mxu2 %v1327_v13  ;;  %v573_v59 = vmul.f32 %v569_v61, %v565_v49  ;;  %v1164_v49 = vld [vmem:[%s2067_s0 + $0x78] sm:$0xff] }
  0x2f   :  { %438 = vmatpush.msrb.mxu0 %v1332_v14  ;;  %487 = vmatpush.msrb.mxu1 %v1339_v15  ;;  %v786_v54 = vmul.f32 %v1450_v34, %v1164_v49 }
  0x30   :  { %668 = vmatpush.msrb.mxu3 %v1351_v17  ;;  %635 = vmatpush.msrb.mxu2 %v1346_v16  ;;  %v1737_v38 = vadd.f32 %v573_v59, %v561_v42 }
  0x31   :  { %439 = vmatpush.msrb.mxu0 %v1351_v17  ;;  %488 = vmatpush.msrb.mxu1 %v1358_v18  ;;  %v790_v55 = vadd.f32 %v1455_v35, %v786_v54 }
  0x32   :  { %669 = vmatpush.msrb.mxu3 %v1370_v20  ;;  %v383_v40 = vld [vmem:[#allocation2 + $0x10] sm:$0xff]  ;;  %636 = vmatpush.msrb.mxu2 %v1365_v19  ;;  %vm581_vm11 = vcmp.gt.f32.partialorder %v1737_v38, 0.5 }
  0x33   :  { %v1741_v46 = vld [vmem:[#allocation2 + $0xa] sm:$0xff]  ;;  %440 = vmatpush.msrb.mxu0 %v1370_v20  ;;  %489 = vmatpush.msrb.mxu1 %v1377_v21  ;;  %v384_v42 = vld [vmem:[#allocation2 + $0x18] sm:$0xff]  ;;  %v1120_v59 = vsel %vm581_vm11, 1.0, %v2133_v63 }
  0x34   :  { %591 = vst [vmem:[#allocation2 + $0x9] sm:$0xff] %v1118_v50  ;;  %420 = vmatmul.f32.gmra.mxu3 %v382_v45  ;;  %637 = vmatpush.msrb.mxu2 %v1384_v22  ;;  %v1758_v61 = vld [vmem:[#allocation2 + $0x12] sm:$0xff]  ;;  %v1162_v45 = vld [vmem:[%s2067_s0 + $0x68] sm:$0xff]  ;;  %v794_v22 = vmul.f32 0.25, %v1737_v38  ;;  %v798_v19 = vsub.f32 1.0, %v1120_v59 }
  0x35   :  { %670 = vmatpush.msrb.mxu3 %v1389_v23  ;;  %2137 = vst [vmem:[#allocation24_spill] sm:$0xff] %v1758_v61  ;;  %441 = vmatpush.msrb.mxu0 %v1389_v23  ;;  %v785_v61 = vmul.f32 %v1450_v34, %v1163_v33  ;;  %v784_v16 = vmul.f32 %v1450_v34, %v1162_v45  ;;  %v796_v23 = vsub.f32 1.0, %v1118_v50 }
  0x36   :  { %490 = vmatpush.msrb.mxu1 %v1396_v24  ;;  %592 = vst [vmem:[#allocation2 + $0x11] sm:$0xff] %v1119_v37  ;;  %194 = vmatmul.f32.gmra.mxu0 %v1666_v57  ;;  %v797_v24 = vsub.f32 1.0, %v1119_v37  ;;  %v792_v57 = vmul.f32 0.25, %v1692_v3 }
  0x37   :  { %1047 = vmatmul.msk.f32.gmra.mxu1 %vm121_vm2, %v2136_v53  ;;  %277 = vmatmul.f32.gmra.mxu2 %v236_v60  ;;  %v802_v60 = vmul.f32 %v798_v19, %v794_v22  ;;  %v789_v37 = vadd.f32 %v1455_v35, %v785_v61  ;;  %v788_v50 = vadd.f32 %v1455_v35, %v784_v16  ;;  %v1797_v22 = vld [vmem:[#allocation2 + $0x1a] sm:$0xff]  ;;  %v795_v61 = vsub.f32 1.0, %v1706_v51 }
  0x38   :  { %671 = vmatpush.msrb.mxu3 %v1408_v26  ;;  %638 = vmatpush.msrb.mxu2 %v1403_v25  ;;  %v801_v49 = vmul.f32 %v797_v24, %v793_v41  ;;  %v800_v33 = vmul.f32 %v796_v23, %v792_v57  ;;  %593 = vst [vmem:[#allocation2 + $0x19] sm:$0xff] %v1120_v59  ;;  %v1161_v23 = vld [vmem:[%s2067_s0 + $0x60] sm:$0xff]  ;;  %v2141_v41 = vld [vmem:[#allocation9_spill] sm:$0xff]  ;;  %v2145_v59 = vld [vmem:[#allocation12_spill] sm:$0xff] }
  0x39   :  { %442 = vmatpush.msrb.mxu0 %v1408_v26  ;;  %491 = vmatpush.msrb.mxu1 %v1413_v27  ;;  %v1795_v19 = vadd.f32 %v802_v60, %v790_v55  ;;  %v783_v54 = vmul.f32 %v1450_v34, %v1161_v23  ;;  %v2144_v34 = vld [vmem:[#allocation11_spill] sm:$0xff]  ;;  %v2146_v57 = vld [vmem:[#allocation13_spill] sm:$0xff]  ;;  %v2147_v55 = vld [vmem:[#allocation14_spill] sm:$0xff] }
  0x3a   :  { %672 = vmatpush.msrb.mxu3 %v1425_v29  ;;  %639 = vmatpush.msrb.mxu2 %v1420_v28  ;;  %v1799_v24 = vadd.f32 %v801_v49, %v789_v37  ;;  %v1803_v16 = vadd.f32 %v800_v33, %v788_v50  ;;  %v2148_v60 = vld [vmem:[#allocation15_spill] sm:$0xff]  ;;  %v2149_v50 = vld [vmem:[#allocation16_spill] sm:$0xff] }
  0x3b   :  { %443 = vmatpush.msrb.mxu0 %v1425_v29  ;;  %492 = vmatpush.msrb.mxu1 %v1430_v30  ;;  %2138 = vst [vmem:[#allocation25_spill] sm:$0xff] %v1795_v19  ;;  %vm810_vm12 = vcmp.gt.f32.partialorder %v1795_v19, 0.5  ;;  %v1854_v19 = vld [vmem:[#allocation2 + $0x2] sm:$0xff] }
  0x3c   :  { %423 = vmatmul.f32.gmra.mxu3 %v383_v40  ;;  %640 = vmatpush.msrb.mxu2 %v1437_v31  ;;  %2139 = vst [vmem:[#allocation26_spill] sm:$0xff] %v1799_v24  ;;  %v791_v40 = vmul.f32 0.25, %v1682_v32  ;;  %vm809_vm13 = vcmp.gt.f32.partialorder %v1799_v24, 0.5  ;;  %vm808_vm14 = vcmp.gt.f32.partialorder %v1803_v16, 0.5  ;;  %v1168_v51 = vsel %vm810_vm12, 1.0, %v2133_v63 }
  0x3d   :  { %673 = vmatpush.msrb.mxu3 %v1462_v36  ;;  %444 = vmatpush.msrb.mxu0 %v1462_v36  ;;  %2140 = vst [vmem:[#allocation27_spill] sm:$0xff] %v1803_v16  ;;  %v1838_v37 = vld [vmem:[#allocation2 + $0xa] sm:$0xff]  ;;  %v1166_v49 = vsel %vm808_vm14, 1.0, %v2133_v63 }
  0x3e   :  { %493 = vmatpush.msrb.mxu1 %v1475_v39  ;;  %641 = vmatpush.msrb.mxu2 %v1487_v43  ;;  %v799_v45 = vmul.f32 %v795_v61, %v791_v40  ;;  %v2152_v40 = vld [vmem:[#allocation17_spill] sm:$0xff]  ;;  %v2153_v61 = vld [vmem:[#allocation18_spill] sm:$0xff] }
  0x3f   :  { %674 = vmatpush.msrb.mxu3 %v1492_v44  ;;  %445 = vmatpush.msrb.mxu0 %v1492_v44  ;;  %v1845_v33 = vld [vmem:[#allocation2 + $0x12] sm:$0xff]  ;;  %v1847_v23 = vld [vmem:[#allocation2 + $0x1a] sm:$0xff] }
  0x40   :  { %494 = vmatpush.msrb.mxu1 %v1501_v47  ;;  %197 = vmatmul.f32.gmra.mxu0 %v1699_v58  ;;  %v2142_v58 = vld [vmem:[#allocation8_spill] sm:$0xff]  ;;  %2150 = vst [vmem:[#allocation9_spill] sm:$0xff] %v1845_v33  ;;  %v611_v33 = vld [vmem:[#allocation2 + $0x8] sm:$0xff] }
  0x41   :  { %1048 = vmatmul.msk.f32.gmra.mxu1 %vm122_vm3, %v2136_v53  ;;  %280 = vmatmul.f32.gmra.mxu2 %v1701_v52  ;;  %v787_v52 = vadd.f32 %v1455_v35, %v783_v54  ;;  %v1167_v35 = vsel %vm809_vm13, 1.0, %v2133_v63  ;;  %2151 = vst [vmem:[#allocation8_spill] sm:$0xff] %v1847_v23  ;;  %v1849_v54 = vld [vmem:[#allocation2 + $0x18] sm:$0xff]  ;;  %v2154_v23 = vld [vmem:[#allocation19_spill] sm:$0xff] }
  0x42   :  { %675 = vmatpush.msrb.mxu3 %v2141_v41  ;;  %642 = vmatpush.msrb.mxu2 %v2142_v58  ;;  %822 = vst [vmem:[#allocation2 + $0x19] sm:$0xff] %v1168_v51 }
  0x43   :  { %446 = vmatpush.msrb.mxu0 %v2141_v41  ;;  %495 = vmatpush.msrb.mxu1 %v2143_v56 }
  0x44   :  { %426 = vmatmul.f32.gmra.mxu3 %v384_v42  ;;  %643 = vmatpush.msrb.mxu2 %v2144_v34  ;;  %v1831_v42 = vadd.f32 %v799_v45, %v787_v52  ;;  %v610_v52 = vld [vmem:[#allocation2] sm:$0xff]  ;;  %v612_v45 = vld [vmem:[#allocation2 + $0x10] sm:$0xff] }
  0x45   :  { %676 = vmatpush.msrb.mxu3 %v2145_v59  ;;  %447 = vmatpush.msrb.mxu0 %v2145_v59  ;;  %821 = vst [vmem:[#allocation2 + $0x11] sm:$0xff] %v1167_v35 }
  0x46   :  { %496 = vmatpush.msrb.mxu1 %v2146_v57  ;;  %644 = vmatpush.msrb.mxu2 %v2147_v55  ;;  %vm807_vm15 = vcmp.gt.f32.partialorder %v1831_v42, 0.5  ;;  %820 = vst [vmem:[#allocation2 + $0x9] sm:$0xff] %v1166_v49 }
  0x47   :  { %677 = vmatpush.msrb.mxu3 %v2148_v60  ;;  %448 = vmatpush.msrb.mxu0 %v2148_v60  ;;  %v1165_v24 = vsel %vm807_vm15, 1.0, %v2133_v63 }
  0x48   :  { %497 = vmatpush.msrb.mxu1 %v2149_v50  ;;  %645 = vmatpush.msrb.mxu2 %v2152_v40  ;;  %819 = vst [vmem:[#allocation2 + $0x1] sm:$0xff] %v1165_v24 }
  0x49   :  { %678 = vmatpush.msrb.mxu3 %v2153_v61  ;;  %449 = vmatpush.msrb.mxu0 %v2153_v61 }
  0x4a   :  { %498 = vmatpush.msrb.mxu1 %v2154_v23  ;;  %1089 = vmatmul.msk.f32.vlgmr.msrb.gmra.mxu0 %vm349_vm4, %v2136_v53 }
  0x4b   :  { %499 = vmatmul.f32.vlgmr.msrb.gmra.mxu1 %v1718_v48  ;;  %646 = vmatmul.f32.vlgmr.msrb.gmra.mxu2 %v610_v52 }
  0x4c   :  { %1137 = vmatmul.msk.f32.vlgmr.msrb.gmra.mxu3 %vm578_vm7, %v2136_v53  ;;  %892 = vmatpush.msra.mxu2 %v1258_v1  ;;  %v2157_v1 = vld [vmem:[#allocation6_spill] sm:$0xff] }
  0x4d   :  { %941 = vmatpush.msra.mxu3 %v1263_v2  ;;  %712 = vmatpush.msra.mxu0 %v1263_v2  ;;  %v2158_v2 = vld [vmem:[#allocation3_spill] sm:$0xff] }
  0x4e   :  { %859 = vmatpush.msra.mxu1 %v1253_v0  ;;  %893 = vmatpush.msra.mxu2 %v1276_v5 }
  0x4f   :  { %942 = vmatpush.msra.mxu3 %v1281_v6  ;;  %713 = vmatpush.msra.mxu0 %v1281_v6  ;;  %v2161_v6 = vld [vmem:[#allocation24_spill] sm:$0xff] }
  0x50   :  { %860 = vmatpush.msra.mxu1 %v1271_v4  ;;  %894 = vmatpush.msra.mxu2 %v1294_v8  ;;  %v2159_v4 = vld [vmem:[#allocation7_spill] sm:$0xff]  ;;  %v2163_v8 = vld [vmem:[#allocation5_spill] sm:$0xff] }
  0x51   :  { %943 = vmatpush.msra.mxu3 %v1301_v9  ;;  %714 = vmatpush.msra.mxu0 %v1301_v9 }
  0x52   :  { %861 = vmatpush.msra.mxu1 %v1289_v7  ;;  %895 = vmatpush.msra.mxu2 %v1313_v11  ;;  %v2162_v7 = vld [vmem:[#allocation4_spill] sm:$0xff]  ;;  %v839_v11 = vld [vmem:[#allocation2] sm:$0xff] }
  0x53   :  { %944 = vmatpush.msra.mxu3 %v1320_v12  ;;  %715 = vmatpush.msra.mxu0 %v1320_v12  ;;  %v922_v12 = vld [vmem:[#allocation2 + $0xa] sm:$0xff] }
  0x54   :  { %502 = vmatmul.f32.gmra.mxu1 %v1741_v46  ;;  %1090 = vmatmul.msk.f32.gmra.mxu0 %vm350_vm5, %v2136_v53 }
  0x55   :  { %649 = vmatmul.f32.gmra.mxu2 %v611_v33  ;;  %1138 = vmatmul.msk.f32.gmra.mxu3 %vm579_vm9, %v2136_v53 }
  0x56   :  { %896 = vmatpush.msra.mxu2 %v1332_v14  ;;  %945 = vmatpush.msra.mxu3 %v1339_v15  ;;  %v840_v14 = vld [vmem:[#allocation2 + $0x8] sm:$0xff] }
  0x57   :  { %716 = vmatpush.msra.mxu0 %v1339_v15  ;;  %862 = vmatpush.msra.mxu1 %v1308_v10  ;;  %v921_v10 = vld [vmem:[#allocation2 + $0x2] sm:$0xff]  ;;  %v923_v15 = vld [vmem:[#allocation2 + $0x12] sm:$0xff] }
  0x58   :  { %897 = vmatpush.msra.mxu2 %v1351_v17  ;;  %946 = vmatpush.msra.mxu3 %v1358_v18  ;;  %v2166_v17 = vld [vmem:[#allocation9_spill] sm:$0xff] }
  0x59   :  { %717 = vmatpush.msra.mxu0 %v1358_v18  ;;  %863 = vmatpush.msra.mxu1 %v1327_v13 }
  0x5a   :  { %898 = vmatpush.msra.mxu2 %v1370_v20  ;;  %947 = vmatpush.msra.mxu3 %v1377_v21  ;;  %v841_v20 = vld [vmem:[#allocation2 + $0x10] sm:$0xff] }
  0x5b   :  { %718 = vmatpush.msra.mxu0 %v1377_v21  ;;  %864 = vmatpush.msra.mxu1 %v2158_v2  ;;  %v924_v21 = vld [vmem:[#allocation2 + $0x1a] sm:$0xff] }
  0x5c   :  { %899 = vmatpush.msra.mxu2 %v2157_v1  ;;  %948 = vmatpush.msra.mxu3 %v2159_v4 }
  0x5d   :  { %719 = vmatpush.msra.mxu0 %v2159_v4  ;;  %505 = vmatmul.f32.gmra.mxu1 %v2161_v6 }
  0x5e   :  { %1091 = vmatmul.msk.f32.gmra.mxu0 %vm351_vm6, %v2136_v53  ;;  %652 = vmatmul.f32.gmra.mxu2 %v612_v45 }
  0x5f   :  { %1139 = vmatmul.msk.f32.gmra.mxu3 %vm580_vm10, %v2136_v53  ;;  %900 = vmatpush.msra.mxu2 %v1408_v26 }
  0x60   :  { %949 = vmatpush.msra.mxu3 %v1413_v27  ;;  %720 = vmatpush.msra.mxu0 %v1413_v27  ;;  %v842_v27 = vld [vmem:[#allocation2 + $0x18] sm:$0xff] }
  0x61   :  { %865 = vmatpush.msra.mxu1 %v2162_v7  ;;  %901 = vmatpush.msra.mxu2 %v1425_v29 }
  0x62   :  { %950 = vmatpush.msra.mxu3 %v1430_v30  ;;  %721 = vmatpush.msra.mxu0 %v1430_v30 }
  0x63   :  { %866 = vmatpush.msra.mxu1 %v2163_v8  ;;  %902 = vmatpush.msra.mxu2 %v1462_v36 }
  0x64   :  { %951 = vmatpush.msra.mxu3 %v1475_v39  ;;  %722 = vmatpush.msra.mxu0 %v1475_v39 }
  0x65   :  { %867 = vmatpush.msra.mxu1 %v1403_v25  ;;  %903 = vmatpush.msra.mxu2 %v1492_v44  ;;  %v2168_v25 = vld [vmem:[#allocation8_spill] sm:$0xff] }
  0x66   :  { %952 = vmatpush.msra.mxu3 %v1501_v47  ;;  %723 = vmatpush.msra.mxu0 %v1501_v47 }
  0x67   :  { %868 = vmatpush.msra.mxu1 %v1420_v28  ;;  %1092 = vmatmul.msk.f32.gmra.mxu0 %vm352_vm8, %v2136_v53  ;;  %v24_v28 = vlaneseq }
  0x68   :  { %508 = vmatmul.f32.gmra.mxu1 %v1797_v22  ;;  %655 = vmatmul.f32.gmra.mxu2 %v1849_v54 }
  0x69   :  { %1140 = vmatmul.msk.f32.gmra.mxu3 %vm581_vm11, %v2136_v53  ;;  %904 = vmatpush.msra.mxu2 %v2141_v41  ;;  %v25_v29 = vshrl.u32 %v24_v28, 7 }
  0x6a   :  { %953 = vmatpush.msra.mxu3 %v2143_v56  ;;  %724 = vmatpush.msra.mxu0 %v2143_v56 }
  0x6b   :  { %869 = vmatpush.msra.mxu1 %v1437_v31  ;;  %905 = vmatpush.msra.mxu2 %v2145_v59  ;;  %v33_v30 = vand.u32 15, %v25_v29  ;;  %v26_v47 = vadd.s32 8, %v25_v29  ;;  %v27_v3 = vadd.s32 16, %v25_v29  ;;  %v28_v49 = vadd.s32 24, %v25_v29 }
  0x6c   :  { %954 = vmatpush.msra.mxu3 %v2146_v57  ;;  %725 = vmatpush.msra.mxu0 %v2146_v57 }
  0x6d   :  { %870 = vmatpush.msra.mxu1 %v1487_v43  ;;  %906 = vmatpush.msra.mxu2 %v2148_v60  ;;  %vm77_vm0 = vcmp.gt.s32.totalorder %v33_v30, 0  ;;  %v40_v48 = vand.u32 15, %v26_v47  ;;  %v47_v46 = vand.u32 15, %v27_v3 }
  0x6e   :  { %955 = vmatpush.msra.mxu3 %v2149_v50  ;;  %726 = vmatpush.msra.mxu0 %v2149_v50  ;;  %v1971_v31 = vsel %vm77_vm0, 1.0, %v2133_v63 }
  0x6f   :  { %871 = vmatpush.msra.mxu1 %v2142_v58  ;;  %907 = vmatpush.msra.mxu2 %v2153_v61  ;;  %vm90_vm1 = vcmp.lt.s32.totalorder %v40_v48, 15  ;;  %vm79_vm2 = vcmp.gt.s32.totalorder %v47_v46, 0 }
  0x70   :  { %956 = vmatpush.msra.mxu3 %v2154_v23  ;;  %727 = vmatpush.msra.mxu0 %v2154_v23  ;;  %v1978_v22 = vsel %vm90_vm1, 1.0, %v2133_v63  ;;  %v1982_v58 = vsel %vm79_vm2, 1.0, %v2133_v63  ;;  %v54_v23 = vand.u32 15, %v28_v49 }
  0x71   :  { %872 = vmatpush.msra.mxu1 %v2144_v34  ;;  %728 = vmatmul.f32.vlgmr.msra.gmra.mxu0 %v1854_v19 }
  0x72   :  { %1185 = vmatmul.msk.f32.vlgmr.msra.gmra.mxu2 %vm807_vm15, %v2136_v53  ;;  %957 = vmatmul.f32.vlgmr.msra.gmra.mxu3 %v921_v10  ;;  %vm92_vm3 = vcmp.lt.s32.totalorder %v54_v23, 15 }
  0x73   :  { %873 = vmatpush.msra.mxu1 %v2147_v55  ;;  %v1992_v1 = vsel %vm92_vm3, 1.0, %v2133_v63 }
  0x75   :  { %874 = vmatpush.msra.mxu1 %v2152_v40 }
  0x76   :  { %875 = vmatmul.f32.vlgmr.msra.gmra.mxu1 %v839_v11 }
  0x79   :  { %731 = vmatmul.f32.gmra.mxu0 %v1838_v37 }
  0x7a   :  { %1186 = vmatmul.msk.f32.gmra.mxu2 %vm808_vm14, %v2136_v53  ;;  %960 = vmatmul.f32.gmra.mxu3 %v922_v12 }
  0x7e   :  { %878 = vmatmul.f32.gmra.mxu1 %v840_v14 }
  0x81   :  { %734 = vmatmul.f32.gmra.mxu0 %v2166_v17 }
  0x82   :  { %1187 = vmatmul.msk.f32.gmra.mxu2 %vm809_vm13, %v2136_v53  ;;  %963 = vmatmul.f32.gmra.mxu3 %v923_v15 }
  0x86   :  { %881 = vmatmul.f32.gmra.mxu1 %v841_v20 }
  0x89   :  { %737 = vmatmul.f32.gmra.mxu0 %v2168_v25 }
  0x8a   :  { %1188 = vmatmul.msk.f32.gmra.mxu2 %vm810_vm12, %v2136_v53  ;;  %966 = vmatmul.f32.gmra.mxu3 %v924_v21 }
  0x8e   :  { %884 = vmatmul.f32.gmra.mxu1 %v842_v27 }
  0x9f   :  { %v189_v36 = vpop.f32.mrf.mxu0 }
  0xa0   :  { %v222_v39 = vpop.f32.mrf.mxu1  ;;  %v201_v43 = vmul.f32 %v1971_v31, %v189_v36 }
  0xa2   :  { %v223_v44 = vadd.f32 %v222_v39, %v201_v43 }
  0xa6   :  { %v272_v32 = vpop.f32.mrf.mxu2 }
  0xa7   :  { %v288_v62 = vadd.f32 %v272_v32, %v223_v44 }
  0xa9   :  { %292 = vst [vmem:[%s2070_s4] sm:$0xff] %v288_v62  ;;  %v192_v53 = vpop.f32.mrf.mxu0  ;;  %v306_v57 = vmul.f32 %v288_v62, %v288_v62 }
  0xaa   :  { %v225_v38 = vpop.f32.mrf.mxu1 }
  0xab   :  { %v226_v16 = vadd.f32 %v225_v38, %v192_v53 }
  0xaf   :  { %v418_v19 = vpop.f32.mrf.mxu3 }
  0xb0   :  { %v275_v24 = vpop.f32.mrf.mxu2  ;;  %v430_v6 = vmul.f32 %v1971_v31, %v418_v19 }
  0xb1   :  { %v285_v41 = vmul.f32 %v1978_v22, %v275_v24 }
  0xb3   :  { %v289_v56 = vadd.f32 %v285_v41, %v226_v16  ;;  %v195_v34 = vpop.f32.mrf.mxu0 }
  0xb4   :  { %v228_v59 = vpop.f32.mrf.mxu1  ;;  %v203_v51 = vmul.f32 %v1982_v58, %v195_v34 }
  0xb5   :  { %293 = vst [vmem:[%s2070_s4 + $0x8] sm:$0xff] %v289_v56  ;;  %v307_v42 = vmul.f32 %v289_v56, %v289_v56  ;;  %v296_v35 = vadd.f32 %v289_v56, %v288_v62 }
  0xb6   :  { %v229_v60 = vadd.f32 %v228_v59, %v203_v51 }
  0xb7   :  { %v421_v55 = vpop.f32.mrf.mxu3  ;;  %v310_v37 = vadd.f32 %v307_v42, %v306_v57 }
  0xba   :  { %v278_v50 = vpop.f32.mrf.mxu2 }
  0xbb   :  { %v290_v33 = vadd.f32 %v278_v50, %v229_v60 }
  0xbd   :  { %294 = vst [vmem:[%s2070_s4 + $0x10] sm:$0xff] %v290_v33  ;;  %v297_v54 = vadd.f32 %v296_v35, %v290_v33  ;;  %v308_v40 = vmul.f32 %v290_v33, %v290_v33  ;;  %v198_v61 = vpop.f32.mrf.mxu0 }
  0xbe   :  { %v231_v52 = vpop.f32.mrf.mxu1 }
  0xbf   :  { %v424_v45 = vpop.f32.mrf.mxu3  ;;  %v311_v0 = vadd.f32 %v310_v37, %v308_v40  ;;  %v232_v4 = vadd.f32 %v231_v52, %v198_v61 }
  0xc0   :  { %v432_v29 = vmul.f32 %v1982_v58, %v424_v45 }
  0xc4   :  { %v281_v2 = vpop.f32.mrf.mxu2 }
  0xc5   :  { %v287_v5 = vmul.f32 %v1992_v1, %v281_v2 }
  0xc7   :  { %v427_v7 = vpop.f32.mrf.mxu3  ;;  %v291_v8 = vadd.f32 %v287_v5, %v232_v4  ;;  %v451_v9 = vpop.f32.mrf.mxu0 }
  0xc8   :  { %v500_v10 = vpop.f32.mrf.mxu1  ;;  %v452_v11 = vadd.f32 %v451_v9, %v430_v6 }
  0xc9   :  { %295 = vst [vmem:[%s2070_s4 + $0x18] sm:$0xff] %v291_v8  ;;  %v1999_v12 = vadd.f32 %v297_v54, %v291_v8  ;;  %v309_v13 = vmul.f32 %v291_v8, %v291_v8 }
  0xca   :  { %v516_v63 = vadd.f32 %v500_v10, %v452_v11 }
  0xcb   :  { %v2001_v14 = vadd.f32 %v311_v0, %v309_v13 }
  0xcc   :  { %1109 = vst [vmem:[%s2070_s4 + $0x20] sm:$0xff] %v516_v63 }
  0xce   :  { %v647_v15 = vpop.f32.mrf.mxu2 }
  0xcf   :  { %v680_v17 = vpop.f32.mrf.mxu3  ;;  %v659_v38 = vmul.f32 %v1971_v31, %v647_v15  ;;  %v299_v15 = vrot.slane %v1999_v12, 4 }
  0xd1   :  { %v503_v18 = vpop.f32.mrf.mxu1  ;;  %v454_v20 = vpop.f32.mrf.mxu0  ;;  %v681_v24 = vadd.f32 %v680_v17, %v659_v38 }
  0xd2   :  { %v513_v21 = vmul.f32 %v1978_v22, %v503_v18  ;;  %v455_v25 = vadd.f32 %v454_v20, %v421_v55 }
  0xd4   :  { %v517_v26 = vadd.f32 %v513_v21, %v455_v25 }
  0xd6   :  { %1110 = vst [vmem:[%s2070_s4 + $0x28] sm:$0xff] %v517_v26  ;;  %v536_v37 = vmul.f32 %v517_v26, %v517_v26  ;;  %v525_v54 = vadd.f32 %v517_v26, %v516_v63  ;;  %v313_v26 = vrot.slane %v2001_v14, 4 }
  0xd8   :  { %v650_v27 = vpop.f32.mrf.mxu2  ;;  %v683_v28 = vpop.f32.mrf.mxu3 }
  0xd9   :  { %v684_v35 = vadd.f32 %v683_v28, %v650_v27 }
  0xda   :  { %v506_v36 = vpop.f32.mrf.mxu1 }
  0xdb   :  { %v457_v30 = vpop.f32.mrf.mxu0 }
  0xdc   :  { %v458_v39 = vadd.f32 %v457_v30, %v432_v29 }
  0xde   :  { %v518_v43 = vadd.f32 %v506_v36, %v458_v39 }
  0xe0   :  { %1111 = vst [vmem:[%s2070_s4 + $0x30] sm:$0xff] %v518_v43  ;;  %v537_v23 = vmul.f32 %v518_v43, %v518_v43  ;;  %v526_v4 = vadd.f32 %v525_v54, %v518_v43 }
  0xe1   :  { %v653_v44 = vpop.f32.mrf.mxu2 }
  0xe2   :  { %v686_v47 = vpop.f32.mrf.mxu3  ;;  %v661_v49 = vmul.f32 %v1982_v58, %v653_v44 }
  0xe4   :  { %v460_v32 = vpop.f32.mrf.mxu0  ;;  %v687_v52 = vadd.f32 %v686_v47, %v661_v49 }
  0xe5   :  { %v509_v3 = vpop.f32.mrf.mxu1  ;;  %v461_v62 = vadd.f32 %v460_v32, %v427_v7 }
  0xe6   :  { %v515_v48 = vmul.f32 %v1992_v1, %v509_v3 }
  0xe8   :  { %v519_v53 = vadd.f32 %v515_v48, %v461_v62 }
  0xea   :  { %1112 = vst [vmem:[%s2070_s4 + $0x38] sm:$0xff] %v519_v53  ;;  %v538_v45 = vmul.f32 %v519_v53, %v519_v53  ;;  %v527_v9 = vadd.f32 %v526_v4, %v519_v53  ;;  %v314_v53 = vadd.f32 %v313_v26, %v2001_v14 }
  0xeb   :  { %v656_v46 = vpop.f32.mrf.mxu2 }
  0xec   :  { %v689_v19 = vpop.f32.mrf.mxu3 }
  0xed   :  { %v690_v27 = vadd.f32 %v689_v19, %v656_v46 }
  0xee   :  { %v729_v16 = vpop.f32.mrf.mxu0 }
  0xef   :  { %v745_v41 = vadd.f32 %v729_v16, %v681_v24 }
  0xf1   :  { %1157 = vst [vmem:[%s2070_s4 + $0x40] sm:$0xff] %v745_v41  ;;  %v764_v28 = vmul.f32 %v745_v41, %v745_v41 }
  0xf3   :  { %v876_v56 = vpop.f32.mrf.mxu1 }
  0xf4   :  { %v888_v34 = vmul.f32 %v1971_v31, %v876_v56  ;;  %v535_v31 = vmul.f32 %v516_v63, %v516_v63 }
  0xf5   :  { %v909_v59 = vpop.f32.mrf.mxu2  ;;  %v958_v57 = vpop.f32.mrf.mxu3 }
  0xf6   :  { %v910_v51 = vadd.f32 %v909_v59, %v888_v34  ;;  %v732_v42 = vpop.f32.mrf.mxu0  ;;  %v539_v61 = vadd.f32 %v536_v37, %v535_v31  ;;  %v315_v37 = vrot.slane %v314_v53, 2 }
  0xf7   :  { %v742_v60 = vmul.f32 %v1978_v22, %v732_v42 }
  0xf8   :  { %v2023_v55 = vadd.f32 %v958_v57, %v910_v51  ;;  %v540_v7 = vadd.f32 %v539_v61, %v537_v23  ;;  %v316_v4 = vadd.f32 %v315_v37, %v314_v53 }
  0xf9   :  { %v746_v50 = vadd.f32 %v742_v60, %v684_v35 }
  0xfa   :  { %1205 = vst [vmem:[%s2070_s4 + $0x60] sm:$0xff] %v2023_v55  ;;  %v541_v11 = vadd.f32 %v540_v7, %v538_v45  ;;  %v993_v42 = vmul.f32 %v2023_v55, %v2023_v55 }
  0xfb   :  { %v879_v33 = vpop.f32.mrf.mxu1  ;;  %1158 = vst [vmem:[%s2070_s4 + $0x48] sm:$0xff] %v746_v50  ;;  %v765_v20 = vmul.f32 %v746_v50, %v746_v50  ;;  %v754_v30 = vadd.f32 %v746_v50, %v745_v41 }
  0xfc   :  { %v542_v18 = vrot.slane %v541_v11, 4 }
  0xfd   :  { %v912_v40 = vpop.f32.mrf.mxu2  ;;  %v961_v2 = vpop.f32.mrf.mxu3  ;;  %v768_v3 = vadd.f32 %v765_v20, %v764_v28 }
  0xfe   :  { %v913_v0 = vadd.f32 %v912_v40, %v879_v33  ;;  %v971_v5 = vmul.f32 %v1978_v22, %v961_v2  ;;  %v735_v6 = vpop.f32.mrf.mxu0  ;;  %v528_v22 = vrot.slane %v527_v9, 4  ;;  %v543_v47 = vadd.f32 %v542_v18, %v541_v11 }
  0xff   :  { %v747_v8 = vadd.f32 %v735_v6, %v687_v52 }
 0x100   :  { %v975_v10 = vadd.f32 %v971_v5, %v913_v0  ;;  %v529_v44 = vadd.f32 %v528_v22, %v527_v9  ;;  %v544_v56 = vrot.slane %v543_v47, 2  ;;  %v317_v22 = vrot.slane %v316_v4, 1 }
 0x101   :  { %1159 = vst [vmem:[%s2070_s4 + $0x50] sm:$0xff] %v747_v8  ;;  %v766_v36 = vmul.f32 %v747_v8, %v747_v8  ;;  %v755_v32 = vadd.f32 %v754_v30, %v747_v8 }
 0x102   :  { %1206 = vst [vmem:[%s2070_s4 + $0x68] sm:$0xff] %v975_v10  ;;  %v530_v24 = vrot.slane %v529_v44, 2  ;;  %v994_v16 = vmul.f32 %v975_v10, %v975_v10  ;;  %v983_v14 = vadd.f32 %v975_v10, %v2023_v55  ;;  %v545_v45 = vadd.f32 %v544_v56, %v543_v47 }
 0x103   :  { %v882_v13 = vpop.f32.mrf.mxu1  ;;  %v769_v38 = vadd.f32 %v768_v3, %v766_v36  ;;  %v318_v30 = vadd.f32 %v317_v22, %v316_v4 }
 0x104   :  { %v890_v63 = vmul.f32 %v1982_v58, %v882_v13  ;;  %v300_v58 = vadd.f32 %v299_v15, %v1999_v12  ;;  %v531_v33 = vadd.f32 %v530_v24, %v529_v44  ;;  %v997_v23 = vadd.f32 %v994_v16, %v993_v42 }
 0x105   :  { %v915_v17 = vpop.f32.mrf.mxu2  ;;  %v964_v25 = vpop.f32.mrf.mxu3  ;;  %v546_v11 = vrot.slane %v545_v45, 1 }
 0x106   :  { %v916_v21 = vadd.f32 %v915_v17, %v890_v63  ;;  %v738_v29 = vpop.f32.mrf.mxu0  ;;  %v301_v12 = vrot.slane %v300_v58, 2  ;;  %v532_v6 = vrot.slane %v531_v33, 1 }
 0x107   :  { %v744_v43 = vmul.f32 %v1992_v1, %v738_v29  ;;  %v547_v26 = vadd.f32 %v546_v11, %v545_v45 }
 0x108   :  { %v976_v39 = vadd.f32 %v964_v25, %v916_v21  ;;  %v302_v40 = vadd.f32 %v301_v12, %v300_v58  ;;  %v533_v17 = vadd.f32 %v532_v6, %v531_v33 }
 0x109   :  { %v748_v62 = vadd.f32 %v744_v43, %v690_v27  ;;  %v548_v44 = vadd.f32 %v547_v26, %v318_v30 }
 0x10a   :  { %1207 = vst [vmem:[%s2070_s4 + $0x70] sm:$0xff] %v976_v39  ;;  %v995_v35 = vmul.f32 %v976_v39, %v976_v39  ;;  %v984_v31 = vadd.f32 %v983_v14, %v976_v39  ;;  %v303_v9 = vrot.slane %v302_v40, 1 }
 0x10b   :  { %v885_v48 = vpop.f32.mrf.mxu1  ;;  %1160 = vst [vmem:[%s2070_s4 + $0x58] sm:$0xff] %v748_v62  ;;  %v756_v46 = vadd.f32 %v755_v32, %v748_v62  ;;  %v767_v19 = vmul.f32 %v748_v62, %v748_v62 }
 0x10c   :  { %v998_v0 = vadd.f32 %v997_v23, %v995_v35  ;;  %v304_v25 = vadd.f32 %v303_v9, %v302_v40 }
 0x10d   :  { %v918_v41 = vpop.f32.mrf.mxu2  ;;  %v757_v34 = vrot.slane %v756_v46, 4  ;;  %v770_v59 = vadd.f32 %v769_v38, %v767_v19  ;;  %v967_v57 = vpop.f32.mrf.mxu3 }
 0x10e   :  { %v919_v51 = vadd.f32 %v918_v41, %v885_v48  ;;  %v973_v60 = vmul.f32 %v1992_v1, %v967_v57  ;;  %v534_v36 = vadd.f32 %v533_v17, %v304_v25 }
 0x10f   :  { %v758_v49 = vadd.f32 %v757_v34, %v756_v46  ;;  %v771_v50 = vrot.slane %v770_v59, 4 }
 0x110   :  { %v977_v54 = vadd.f32 %v973_v60, %v919_v51 }
 0x111   :  { %v759_v61 = vrot.slane %v758_v49, 2  ;;  %v772_v52 = vadd.f32 %v771_v50, %v770_v59 }
 0x112   :  { %1208 = vst [vmem:[%s2070_s4 + $0x78] sm:$0xff] %v977_v54  ;;  %v985_v55 = vadd.f32 %v984_v31, %v977_v54  ;;  %v996_v2 = vmul.f32 %v977_v54, %v977_v54 }
 0x113   :  { %v760_v1 = vadd.f32 %v759_v61, %v758_v49  ;;  %v773_v5 = vrot.slane %v772_v52, 2 }
 0x114   :  { %v986_v7 = vrot.slane %v985_v55, 4  ;;  %v999_v8 = vadd.f32 %v998_v0, %v996_v2 }
 0x115   :  { %v774_v10 = vadd.f32 %v773_v5, %v772_v52  ;;  %v761_v13 = vrot.slane %v760_v1, 1 }
 0x116   :  { %v987_v63 = vadd.f32 %v986_v7, %v985_v55  ;;  %v1000_v15 = vrot.slane %v999_v8, 4 }
 0x117   :  { %v775_v18 = vrot.slane %v774_v10, 1  ;;  %v762_v27 = vadd.f32 %v761_v13, %v760_v1 }
 0x118   :  { %v988_v20 = vrot.slane %v987_v63, 2  ;;  %v1001_v21 = vadd.f32 %v1000_v15, %v999_v8 }
 0x119   :  { %v776_v39 = vadd.f32 %v775_v18, %v774_v10  ;;  %v763_v47 = vadd.f32 %v762_v27, %v534_v36 }
 0x11a   :  { %v989_v28 = vadd.f32 %v988_v20, %v987_v63  ;;  %v1002_v29 = vrot.slane %v1001_v21, 2 }
 0x11b   :  { %v777_v62 = vadd.f32 %v776_v39, %v548_v44 }
 0x11c   :  { %v990_v43 = vrot.slane %v989_v28, 1  ;;  %v1003_v58 = vadd.f32 %v1002_v29, %v1001_v21 }
 0x11e   :  { %v991_v32 = vadd.f32 %v990_v43, %v989_v28  ;;  %v1004_v3 = vrot.slane %v1003_v58, 1 }
 0x120   :  { %v992_v48 = vadd.f32 %v991_v32, %v763_v47  ;;  %v1005_v53 = vadd.f32 %v1004_v3, %v1003_v58 }
 0x122   :  { %v1006_v38 = vadd.f32 %v1005_v53, %v777_v62  ;;  %1007 = vst [vmem:[%s2071_s5] sm:$0x1] %v992_v48 }
 0x124   :  { %1008 = vst [vmem:[%s2072_s6] sm:$0x1] %v1006_v38 }

// kernel: basic_block.5
= control target key start
LH: loop header
LB: loop body
LE: loop exit
PB: predicated region body
PF: predicated region fallthrough
CT: control target
= control target key end

     0   :  { %s338_s0 = inlined_call_operand.vmem [shape: f32[128,128], index: 0, kind: input, shape index: {}]   ;;  %s339_s2 = inlined_call_operand.vmem [shape: f32[1,128], index: 2, kind: input, shape index: {}]   ;;  %s340_s3 = inlined_call_operand.vmem [shape: f32[1,128], index: 3, kind: input, shape index: {}]   ;;  %s341_s1 = inlined_call_operand.vmem [shape: f32[128,128], index: 1, kind: input, shape index: {}]   ;;  %s342_s4 = inlined_call_operand.vmem [shape: f32[128,128], index: 4, kind: output, shape index: {}]  }
   0x1   :  { %v17_v0 = vld [vmem:[%s338_s0] sm:$0xff]  ;;  %v18_v4 = vld [vmem:[%s338_s0 + $0x8] sm:$0xff]  ;;  %v19_v5 = vld [vmem:[%s338_s0 + $0x10] sm:$0xff] }
   0x2   :  { %v158_v1 = vld [vmem:[%s339_s2] ss:$0 sm:$0xff]  ;;  %v74_v8 = vld [vmem:[%s341_s1 + $0x8] sm:$0xff]  ;;  %v20_v10 = vld [vmem:[%s338_s0 + $0x18] sm:$0xff] }
   0x3   :  { %v163_v2 = vld [vmem:[%s340_s3] ss:$0 sm:$0xff]  ;;  %v37_v3 = vmul.f32 %v158_v1, %v17_v0  ;;  %v38_v7 = vmul.f32 %v158_v1, %v18_v4  ;;  %v39_v9 = vmul.f32 %v158_v1, %v19_v5  ;;  %v75_v12 = vld [vmem:[%s341_s1 + $0x10] sm:$0xff]  ;;  %v40_v13 = vmul.f32 %v158_v1, %v20_v10  ;;  %v22_v15 = vld [vmem:[%s338_s0 + $0x28] sm:$0xff] }
   0x4   :  { %v73_v6 = vld [vmem:[%s341_s1] sm:$0xff]  ;;  %v76_v18 = vld [vmem:[%s341_s1 + $0x18] sm:$0xff]  ;;  %v42_v21 = vmul.f32 %v158_v1, %v22_v15  ;;  %v23_v22 = vld [vmem:[%s338_s0 + $0x30] sm:$0xff] }
   0x5   :  { %v57_v11 = vadd.f32 %v163_v2, %v37_v3  ;;  %v21_v14 = vld [vmem:[%s338_s0 + $0x20] sm:$0xff]  ;;  %v58_v16 = vadd.f32 %v163_v2, %v38_v7  ;;  %v59_v17 = vadd.f32 %v163_v2, %v39_v9  ;;  %v60_v24 = vadd.f32 %v163_v2, %v40_v13  ;;  %v78_v25 = vld [vmem:[%s341_s1 + $0x28] sm:$0xff]  ;;  %v24_v27 = vld [vmem:[%s338_s0 + $0x38] sm:$0xff] }
   0x6   :  { %v41_v19 = vmul.f32 %v158_v1, %v21_v14  ;;  %v77_v20 = vld [vmem:[%s341_s1 + $0x20] sm:$0xff]  ;;  %v43_v26 = vmul.f32 %v158_v1, %v23_v22  ;;  %v62_v32 = vadd.f32 %v163_v2, %v42_v21  ;;  %v79_v33 = vld [vmem:[%s341_s1 + $0x30] sm:$0xff]  ;;  %v26_v34 = vld [vmem:[%s338_s0 + $0x48] sm:$0xff]  ;;  %v44_v37 = vmul.f32 %v158_v1, %v24_v27 }
   0x7   :  { %v89_v23 = vadd.f32 %v73_v6, %v57_v11  ;;  %v25_v28 = vld [vmem:[%s338_s0 + $0x40] sm:$0xff]  ;;  %v90_v29 = vadd.f32 %v74_v8, %v58_v16  ;;  %v91_v30 = vadd.f32 %v75_v12, %v59_v17  ;;  %v92_v35 = vadd.f32 %v76_v18, %v60_v24  ;;  %v27_v39 = vld [vmem:[%s338_s0 + $0x50] sm:$0xff]  ;;  %v28_v40 = vld [vmem:[%s338_s0 + $0x58] sm:$0xff] }
   0x8   :  { %v61_v31 = vadd.f32 %v163_v2, %v41_v19  ;;  %v63_v36 = vadd.f32 %v163_v2, %v43_v26  ;;  %v45_v38 = vmul.f32 %v158_v1, %v25_v28  ;;  %v94_v42 = vadd.f32 %v78_v25, %v62_v32  ;;  %v80_v43 = vld [vmem:[%s341_s1 + $0x38] sm:$0xff]  ;;  %v81_v44 = vld [vmem:[%s341_s1 + $0x40] sm:$0xff]  ;;  %v82_v51 = vld [vmem:[%s341_s1 + $0x48] sm:$0xff] }
   0x9   :  { %105 = vst [vmem:[%s342_s4] sm:$0xff] %v89_v23  ;;  %v46_v45 = vmul.f32 %v158_v1, %v26_v34  ;;  %v47_v46 = vmul.f32 %v158_v1, %v27_v39  ;;  %v29_v47 = vld [vmem:[%s338_s0 + $0x60] sm:$0xff]  ;;  %v64_v49 = vadd.f32 %v163_v2, %v44_v37  ;;  %v48_v52 = vmul.f32 %v158_v1, %v28_v40  ;;  %v30_v53 = vld [vmem:[%s338_s0 + $0x68] sm:$0xff]  ;;  %v31_v54 = vld [vmem:[%s338_s0 + $0x70] sm:$0xff] }
   0xa   :  { %106 = vst [vmem:[%s342_s4 + $0x8] sm:$0xff] %v90_v29  ;;  %v93_v41 = vadd.f32 %v77_v20, %v61_v31  ;;  %v95_v48 = vadd.f32 %v79_v33, %v63_v36  ;;  %v65_v50 = vadd.f32 %v163_v2, %v45_v38  ;;  %v83_v57 = vld [vmem:[%s341_s1 + $0x50] sm:$0xff]  ;;  %v49_v58 = vmul.f32 %v158_v1, %v29_v47  ;;  %v32_v60 = vld [vmem:[%s338_s0 + $0x78] sm:$0xff]  ;;  %v85_v6 = vld [vmem:[%s341_s1 + $0x60] sm:$0xff] }
   0xb   :  { %107 = vst [vmem:[%s342_s4 + $0x10] sm:$0xff] %v91_v30  ;;  %v66_v55 = vadd.f32 %v163_v2, %v46_v45  ;;  %v67_v56 = vadd.f32 %v163_v2, %v47_v46  ;;  %v50_v59 = vmul.f32 %v158_v1, %v30_v53  ;;  %v96_v61 = vadd.f32 %v80_v43, %v64_v49  ;;  %v84_v0 = vld [vmem:[%s341_s1 + $0x58] sm:$0xff]  ;;  %v86_v9 = vld [vmem:[%s341_s1 + $0x68] sm:$0xff]  ;;  %v87_v13 = vld [vmem:[%s341_s1 + $0x70] sm:$0xff] }
   0xc   :  { %108 = vst [vmem:[%s342_s4 + $0x18] sm:$0xff] %v92_v35  ;;  %v97_v62 = vadd.f32 %v81_v44, %v65_v50  ;;  %v68_v63 = vadd.f32 %v163_v2, %v48_v52  ;;  %v51_v3 = vmul.f32 %v158_v1, %v31_v54  ;;  %v69_v5 = vadd.f32 %v163_v2, %v49_v58 }
   0xd   :  { %109 = vst [vmem:[%s342_s4 + $0x20] sm:$0xff] %v93_v41  ;;  %v98_v4 = vadd.f32 %v82_v51, %v66_v55  ;;  %v70_v7 = vadd.f32 %v163_v2, %v50_v59  ;;  %v99_v8 = vadd.f32 %v83_v57, %v67_v56  ;;  %v52_v11 = vmul.f32 %v158_v1, %v32_v60  ;;  %v88_v1 = vld [vmem:[%s341_s1 + $0x78] sm:$0xff] }
   0xe   :  { %110 = vst [vmem:[%s342_s4 + $0x28] sm:$0xff] %v94_v42  ;;  %v71_v10 = vadd.f32 %v163_v2, %v51_v3  ;;  %v100_v12 = vadd.f32 %v84_v0, %v68_v63  ;;  %v101_v14 = vadd.f32 %v85_v6, %v69_v5 }
   0xf   :  { %111 = vst [vmem:[%s342_s4 + $0x30] sm:$0xff] %v95_v48  ;;  %v72_v15 = vadd.f32 %v163_v2, %v52_v11  ;;  %v102_v16 = vadd.f32 %v86_v9, %v70_v7 }
  0x10   :  { %112 = vst [vmem:[%s342_s4 + $0x38] sm:$0xff] %v96_v61  ;;  %v103_v17 = vadd.f32 %v87_v13, %v71_v10 }
  0x11   :  { %113 = vst [vmem:[%s342_s4 + $0x40] sm:$0xff] %v97_v62  ;;  %v104_v18 = vadd.f32 %v88_v1, %v72_v15 }
  0x12   :  { %114 = vst [vmem:[%s342_s4 + $0x48] sm:$0xff] %v98_v4 }
  0x13   :  { %115 = vst [vmem:[%s342_s4 + $0x50] sm:$0xff] %v99_v8 }
  0x14   :  { %116 = vst [vmem:[%s342_s4 + $0x58] sm:$0xff] %v100_v12 }
  0x15   :  { %117 = vst [vmem:[%s342_s4 + $0x60] sm:$0xff] %v101_v14 }
  0x16   :  { %118 = vst [vmem:[%s342_s4 + $0x68] sm:$0xff] %v102_v16 }
  0x17   :  { %119 = vst [vmem:[%s342_s4 + $0x70] sm:$0xff] %v103_v17 }
  0x18   :  { %120 = vst [vmem:[%s342_s4 + $0x78] sm:$0xff] %v104_v18 }

</bundles_post_ra>
